<compile_context>
chip_gen: v7x
topology: tpu7x:2x2x1
jax: 0.10.0
libtpu: 0.0.40
codegen_flags: <defaults>
</compile_context>

<pallas_src>
import functools

import jax
import jax.numpy as jnp
from jax import lax
from jax.experimental import pallas as pl
from jax.experimental.pallas import tpu as pltpu


def _round_up(x, m):
    return (x + m - 1) // m * m


def _conv_stage_kernel(*refs, wp, out_w, add_residual):
    """One conv stage for one (batch, output-depth-plane) grid step.

    refs (final stage):        x0, x1, x2, w, b, mask, res, out
    refs (intermediate stage): x0, x1, x2, w, b, mask, out

      x0/x1/x2: (1, 1, Cin, IN_W)    padded input planes at depth d, d+1, d+2
      w:        (Cout, 27*Cin)       folded conv weights (tap-major, cin-minor)
      b:        (Cout, 1)            bias, f32
      mask:     (1, OUT_W)           1.0 at valid in-plane base positions, f32
      res:      (1, 1, Cout, OUT_W)  residual tile (final stage only)
      out:      (1, 1, Cout, OUT_W)
    """
    if add_residual:
        x0, x1, x2, w_ref, b_ref, m_ref, r_ref, o_ref = refs
    else:
        x0, x1, x2, w_ref, b_ref, m_ref, o_ref = refs
        r_ref = None

    # Build the folded im2col RHS (27*Cin, OUT_W) in VMEM: 9 static lane-shifted
    # slices per depth plane.  No HBM traffic beyond the 3 input planes.
    taps = []
    for x_ref in (x0, x1, x2):                       # kd = 0, 1, 2
        plane = x_ref[0, 0]                          # (Cin, IN_W)
        for kh in range(3):
            for kw in range(3):
                off = kh * wp + kw
                taps.append(plane[:, off:off + out_w])   # (Cin, OUT_W)
    rhs = jnp.concatenate(taps, axis=0)              # (27*Cin, OUT_W)

    # Single MXU matmul, K = 27*Cin, lane-dense N = OUT_W, f32 accumulation.
    acc = jnp.dot(w_ref[...], rhs, preferred_element_type=jnp.float32)
    acc = acc + b_ref[...]                           # (Cout, 1) broadcast
    if add_residual:
        acc = acc + r_ref[0, 0].astype(jnp.float32)
    acc = jnp.maximum(acc, 0.0)                      # ReLU
    acc = acc * m_ref[...]                           # zero pad/garbage positions
    o_ref[0, 0] = acc.astype(o_ref.dtype)


def residual_conv_block(x, params, *, compute_dtype=jnp.float32):
    """Forward pass of residualConvBlock (normalization='none').

    x:      (N, Cin, D, H, W) float32 (PyTorch NCDHW layout)
    params: list of (weight (Cout, Cin_i, 3, 3, 3), bias (Cout,)) per stage
    """
    N, c_in, D, H, W = map(int, x.shape)
    n_stages = len(params)
    assert n_stages >= 1
    assert int(params[-1][0].shape[0]) == c_in, (
        "residual add requires n_filters_in == n_filters_out")

    Dp, Hp, Wp = D + 2, H + 2, W + 2
    out_w = _round_up(H * Wp, 128)                        # lane-dense output width
    in_w = _round_up(max(Hp * Wp, out_w + 2 * Wp + 2), 128)

    cdt = jnp.dtype(compute_dtype)
    x_f32 = x.astype(jnp.float32)

    # Stage-0 input: zero-padded volume, planes flattened: (N, Dp, C, IN_W).
    xp = jnp.pad(x_f32, ((0, 0), (0, 0), (1, 1), (1, 1), (1, 1)))
    h_planes = jnp.transpose(xp, (0, 2, 1, 3, 4)).reshape(N, Dp, c_in, Hp * Wp)
    h_planes = jnp.pad(h_planes, ((0, 0), (0, 0), (0, 0), (0, in_w - Hp * Wp)))
    h_planes = h_planes.astype(cdt)

    # Residual in base-indexed plane layout (N, D, C, OUT_W): x values at valid
    # base positions (b = h*Wp + w), zeros elsewhere.  Only read by last stage.
    xr = jnp.transpose(x_f32, (0, 2, 1, 3, 4))            # (N, D, C, H, W)
    xr = jnp.pad(xr, ((0, 0), (0, 0), (0, 0), (0, 0), (0, Wp - W)))
    res_base = jnp.pad(xr.reshape(N, D, c_in, H * Wp),
                       ((0, 0), (0, 0), (0, 0), (0, out_w - H * Wp))).astype(cdt)

    # In-plane validity mask over base positions (shared by all stages).
    b2 = jnp.arange(out_w, dtype=jnp.int32)
    mask = ((b2 % Wp < W) & (b2 // Wp < H)).astype(jnp.float32).reshape(1, out_w)

    for i, (w, b) in enumerate(params):
        c_out, c_in_i = int(w.shape[0]), int(w.shape[1])
        is_last = i == n_stages - 1
        out_dtype = jnp.float32 if is_last else cdt

        # Fold the 3x3x3 taps into the contraction dim: (Cout, 27*Cin),
        # row order (kd, kh, kw)-major, cin-minor — must match the kernel RHS.
        w_folded = jnp.transpose(w.astype(jnp.float32), (0, 2, 3, 4, 1))
        w_folded = w_folded.reshape(c_out, 27 * c_in_i).astype(cdt)
        b_col = b.reshape(c_out, 1).astype(jnp.float32)

        def x_plane_spec(kd):
            return pl.BlockSpec((1, 1, c_in_i, in_w),
                                lambda n, d, kd=kd: (n, d + kd, 0, 0))

        in_specs = [x_plane_spec(0), x_plane_spec(1), x_plane_spec(2),
                    pl.BlockSpec((c_out, 27 * c_in_i), lambda n, d: (0, 0)),
                    pl.BlockSpec((c_out, 1), lambda n, d: (0, 0)),
                    pl.BlockSpec((1, out_w), lambda n, d: (0, 0))]
        inputs = [h_planes, h_planes, h_planes, w_folded, b_col, mask]
        if is_last:
            in_specs.append(pl.BlockSpec((1, 1, c_out, out_w),
                                         lambda n, d: (n, d, 0, 0)))
            inputs.append(res_base)
        out_spec = pl.BlockSpec((1, 1, c_out, out_w), lambda n, d: (n, d, 0, 0))

        # VMEM budget (double-buffered tiles) + advisory cost estimate.
        step_bytes = (3 * c_in_i * in_w * cdt.itemsize
                      + c_out * out_w * jnp.dtype(out_dtype).itemsize
                      + (c_out * out_w * cdt.itemsize if is_last else 0))
        vmem_limit = int(min(48 * 2**20, max(8 * 2**20, 6 * step_bytes)))
        flops = 2 * N * D * out_w * (27 * c_in_i) * c_out
        bytes_accessed = int(N * D * step_bytes
                             + w_folded.size * cdt.itemsize + mask.size * 4)

        kernel = functools.partial(_conv_stage_kernel, wp=Wp, out_w=out_w,
                                   add_residual=is_last)
        out = pl.pallas_call(
            kernel,
            out_shape=jax.ShapeDtypeStruct((N, D, c_out, out_w), out_dtype),
            grid=(N, D),
            in_specs=in_specs,
            out_specs=out_spec,
            compiler_params=pltpu.CompilerParams(
                dimension_semantics=("parallel", "parallel"),
                vmem_limit_bytes=vmem_limit),
            cost_estimate=pl.CostEstimate(flops=flops, transcendentals=0,
                                          bytes_accessed=bytes_accessed),
        )(*inputs)

        if is_last:
            # Un-flatten base index b = h*Wp + w and return to NCDHW.
            y = out[:, :, :, :H * Wp].reshape(N, D, c_out, H, Wp)[..., :W]
            return jnp.transpose(y, (0, 2, 1, 3, 4))

        # Masked base-indexed output == next stage's zero-padded plane after a
        # constant shift of (1 depth plane, Wp+1 lanes).  One cheap jnp.pad.
        h_planes = jnp.pad(out, ((0, 0), (1, 1), (0, 0),
                                 (Wp + 1, in_w - out_w - (Wp + 1))))


def _reference_forward(x, params):
    """Pure-JAX reference (lax conv) mirroring the PyTorch module, f32."""
    h = x.astype(jnp.float32)
    n_stages = len(params)
    for i, (w, b) in enumerate(params):
        h = lax.conv_general_dilated(
            h, w.astype(jnp.float32), window_strides=(1, 1, 1),
            padding=((1, 1), (1, 1), (1, 1)),
            dimension_numbers=("NCDHW", "OIDHW", "NCDHW"))
        h = h + b.reshape(1, -1, 1, 1, 1)
        if i != n_stages - 1:
            h = jnp.maximum(h, 0.0)
    return jnp.maximum(h + x, 0.0)


if __name__ == "__main__":
    # Module config: n_stages=2, n_filters_in=n_filters_out=4, normalization='none'
    n_stages, c = 2, 4
    N, D, H, W = 2, 16, 16, 16

    key = jax.random.PRNGKey(0)
    kx, *kp = jax.random.split(key, 1 + 2 * n_stages)
    x = jax.random.normal(kx, (N, c, D, H, W), dtype=jnp.float32)

    params = []
    for i in range(n_stages):
        w = 0.1 * jax.random.normal(kp[2 * i], (c, c, 3, 3, 3), dtype=jnp.float32)
        b = 0.1 * jax.random.normal(kp[2 * i + 1], (c,), dtype=jnp.float32)
        params.append((w, b))

    y_ref = jax.block_until_ready(_reference_forward(x, params))

    # f32 path: exact up to accumulation order.
    fwd_f32 = jax.jit(residual_conv_block)
    y = jax.block_until_ready(fwd_f32(x, params))
    assert y.shape == x.shape, (y.shape, x.shape)
    err = float(jnp.max(jnp.abs(y - y_ref)))
    assert jnp.allclose(y, y_ref, rtol=1e-4, atol=1e-4), err

    # bf16 streamed-operand path (v6e/v7x lever: halves HBM bytes; f32 accum).
    fwd_bf16 = jax.jit(functools.partial(residual_conv_block,
                                         compute_dtype=jnp.bfloat16))
    y_bf16 = jax.block_until_ready(fwd_bf16(x, params))
    err_bf16 = float(jnp.max(jnp.abs(y_bf16 - y_ref)))
    assert jnp.allclose(y_bf16, y_ref, rtol=1e-1, atol=1e-1), err_bf16

    print("KERNEL_OK")
</pallas_src>

<mosaic_0001>
module attributes {stable_mosaic.version = 11 : i64} {
  func.func @_conv_stage_kernel(%arg0: i32, %arg1: i32, %arg2: memref<1x1x4x512xf32, #tpu.memory_space<vmem>>, %arg3: memref<1x1x4x512xf32, #tpu.memory_space<vmem>>, %arg4: memref<1x1x4x512xf32, #tpu.memory_space<vmem>>, %arg5: memref<4x108xf32, #tpu.memory_space<vmem>>, %arg6: memref<4x1xf32, #tpu.memory_space<vmem>>, %arg7: memref<1x384xf32, #tpu.memory_space<vmem>>, %arg8: memref<1x1x4x384xf32, #tpu.memory_space<vmem>>) attributes {dimension_semantics = [#tpu.dimension_semantics<parallel>, #tpu.dimension_semantics<parallel>], iteration_bounds = array<i64: 2, 16>, scalar_prefetch = 0 : i64, scratch_operands = 0 : i64, tpu.core_type = #tpu.core_type<tc>, window_params = [{transform_indices = @transform_0, window_bounds = array<i64: 1, 1, 4, 512>}, {transform_indices = @transform_1, window_bounds = array<i64: 1, 1, 4, 512>}, {transform_indices = @transform_2, window_bounds = array<i64: 1, 1, 4, 512>}, {pipeline_mode = #tpu.pipeline_mode<synchronous>, transform_indices = @transform_3, window_bounds = array<i64: 4, 108>}, {pipeline_mode = #tpu.pipeline_mode<synchronous>, transform_indices = @transform_4, window_bounds = array<i64: 4, 1>}, {pipeline_mode = #tpu.pipeline_mode<synchronous>, transform_indices = @transform_5, window_bounds = array<i64: 1, 384>}, {transform_indices = @transform_6, window_bounds = array<i64: 1, 1, 4, 384>}]} {
    %c0 = arith.constant 0 : index
    %c0_0 = arith.constant 0 : index
    %c0_1 = arith.constant 0 : index
    %c0_2 = arith.constant 0 : index
    %0 = vector.load %arg2[%c0, %c0_0, %c0_1, %c0_2] : memref<1x1x4x512xf32, #tpu.memory_space<vmem>>, vector<1x1x4x512xf32>
    %1 = vector.shape_cast %0 : vector<1x1x4x512xf32> to vector<4x512xf32>
    %2 = vector.extract_strided_slice %1 {offsets = [0, 0], sizes = [4, 384], strides = [1, 1]} : vector<4x512xf32> to vector<4x384xf32>
    %3 = vector.extract_strided_slice %1 {offsets = [0, 1], sizes = [4, 384], strides = [1, 1]} : vector<4x512xf32> to vector<4x384xf32>
    %4 = vector.extract_strided_slice %1 {offsets = [0, 2], sizes = [4, 384], strides = [1, 1]} : vector<4x512xf32> to vector<4x384xf32>
    %5 = vector.extract_strided_slice %1 {offsets = [0, 18], sizes = [4, 384], strides = [1, 1]} : vector<4x512xf32> to vector<4x384xf32>
    %6 = vector.extract_strided_slice %1 {offsets = [0, 19], sizes = [4, 384], strides = [1, 1]} : vector<4x512xf32> to vector<4x384xf32>
    %7 = vector.extract_strided_slice %1 {offsets = [0, 20], sizes = [4, 384], strides = [1, 1]} : vector<4x512xf32> to vector<4x384xf32>
    %8 = vector.extract_strided_slice %1 {offsets = [0, 36], sizes = [4, 384], strides = [1, 1]} : vector<4x512xf32> to vector<4x384xf32>
    %9 = vector.extract_strided_slice %1 {offsets = [0, 37], sizes = [4, 384], strides = [1, 1]} : vector<4x512xf32> to vector<4x384xf32>
    %10 = vector.extract_strided_slice %1 {offsets = [0, 38], sizes = [4, 384], strides = [1, 1]} : vector<4x512xf32> to vector<4x384xf32>
    %c0_3 = arith.constant 0 : index
    %c0_4 = arith.constant 0 : index
    %c0_5 = arith.constant 0 : index
    %c0_6 = arith.constant 0 : index
    %11 = vector.load %arg3[%c0_3, %c0_4, %c0_5, %c0_6] : memref<1x1x4x512xf32, #tpu.memory_space<vmem>>, vector<1x1x4x512xf32>
    %12 = vector.shape_cast %11 : vector<1x1x4x512xf32> to vector<4x512xf32>
    %13 = vector.extract_strided_slice %12 {offsets = [0, 0], sizes = [4, 384], strides = [1, 1]} : vector<4x512xf32> to vector<4x384xf32>
    %14 = vector.extract_strided_slice %12 {offsets = [0, 1], sizes = [4, 384], strides = [1, 1]} : vector<4x512xf32> to vector<4x384xf32>
    %15 = vector.extract_strided_slice %12 {offsets = [0, 2], sizes = [4, 384], strides = [1, 1]} : vector<4x512xf32> to vector<4x384xf32>
    %16 = vector.extract_strided_slice %12 {offsets = [0, 18], sizes = [4, 384], strides = [1, 1]} : vector<4x512xf32> to vector<4x384xf32>
    %17 = vector.extract_strided_slice %12 {offsets = [0, 19], sizes = [4, 384], strides = [1, 1]} : vector<4x512xf32> to vector<4x384xf32>
    %18 = vector.extract_strided_slice %12 {offsets = [0, 20], sizes = [4, 384], strides = [1, 1]} : vector<4x512xf32> to vector<4x384xf32>
    %19 = vector.extract_strided_slice %12 {offsets = [0, 36], sizes = [4, 384], strides = [1, 1]} : vector<4x512xf32> to vector<4x384xf32>
    %20 = vector.extract_strided_slice %12 {offsets = [0, 37], sizes = [4, 384], strides = [1, 1]} : vector<4x512xf32> to vector<4x384xf32>
    %21 = vector.extract_strided_slice %12 {offsets = [0, 38], sizes = [4, 384], strides = [1, 1]} : vector<4x512xf32> to vector<4x384xf32>
    %c0_7 = arith.constant 0 : index
    %c0_8 = arith.constant 0 : index
    %c0_9 = arith.constant 0 : index
    %c0_10 = arith.constant 0 : index
    %22 = vector.load %arg4[%c0_7, %c0_8, %c0_9, %c0_10] : memref<1x1x4x512xf32, #tpu.memory_space<vmem>>, vector<1x1x4x512xf32>
    %23 = vector.shape_cast %22 : vector<1x1x4x512xf32> to vector<4x512xf32>
    %24 = vector.extract_strided_slice %23 {offsets = [0, 0], sizes = [4, 384], strides = [1, 1]} : vector<4x512xf32> to vector<4x384xf32>
    %25 = vector.extract_strided_slice %23 {offsets = [0, 1], sizes = [4, 384], strides = [1, 1]} : vector<4x512xf32> to vector<4x384xf32>
    %26 = vector.extract_strided_slice %23 {offsets = [0, 2], sizes = [4, 384], strides = [1, 1]} : vector<4x512xf32> to vector<4x384xf32>
    %27 = vector.extract_strided_slice %23 {offsets = [0, 18], sizes = [4, 384], strides = [1, 1]} : vector<4x512xf32> to vector<4x384xf32>
    %28 = vector.extract_strided_slice %23 {offsets = [0, 19], sizes = [4, 384], strides = [1, 1]} : vector<4x512xf32> to vector<4x384xf32>
    %29 = vector.extract_strided_slice %23 {offsets = [0, 20], sizes = [4, 384], strides = [1, 1]} : vector<4x512xf32> to vector<4x384xf32>
    %30 = vector.extract_strided_slice %23 {offsets = [0, 36], sizes = [4, 384], strides = [1, 1]} : vector<4x512xf32> to vector<4x384xf32>
    %31 = vector.extract_strided_slice %23 {offsets = [0, 37], sizes = [4, 384], strides = [1, 1]} : vector<4x512xf32> to vector<4x384xf32>
    %32 = vector.extract_strided_slice %23 {offsets = [0, 38], sizes = [4, 384], strides = [1, 1]} : vector<4x512xf32> to vector<4x384xf32>
    %33 = tpu.concatenate %2, %3, %4, %5, %6, %7, %8, %9, %10, %13, %14, %15, %16, %17, %18, %19 in 0 : vector<4x384xf32>, vector<4x384xf32>, vector<4x384xf32>, vector<4x384xf32>, vector<4x384xf32>, vector<4x384xf32>, vector<4x384xf32>, vector<4x384xf32>, vector<4x384xf32>, vector<4x384xf32>, vector<4x384xf32>, vector<4x384xf32>, vector<4x384xf32>, vector<4x384xf32>, vector<4x384xf32>, vector<4x384xf32> -> vector<64x384xf32>
    %34 = tpu.concatenate %20, %21, %24, %25, %26, %27, %28, %29, %30, %31, %32 in 0 : vector<4x384xf32>, vector<4x384xf32>, vector<4x384xf32>, vector<4x384xf32>, vector<4x384xf32>, vector<4x384xf32>, vector<4x384xf32>, vector<4x384xf32>, vector<4x384xf32>, vector<4x384xf32>, vector<4x384xf32> -> vector<44x384xf32>
    %35 = tpu.concatenate %33, %34 in 0 : vector<64x384xf32>, vector<44x384xf32> -> vector<108x384xf32>
    %c0_11 = arith.constant 0 : index
    %c0_12 = arith.constant 0 : index
    %36 = vector.load %arg5[%c0_11, %c0_12] : memref<4x108xf32, #tpu.memory_space<vmem>>, vector<4x108xf32>
    %cst = arith.constant dense<0.000000e+00> : vector<4x384xf32>
    %37 = tpu.matmul %36, %35, %cst {dimension_numbers = #tpu.dot_dimension_numbers<[1], [0], [0], [1], [0, 0, 1, 1], [], []>} : vector<4x108xf32>, vector<108x384xf32>, vector<4x384xf32> -> vector<4x384xf32>
    %c0_13 = arith.constant 0 : index
    %c0_14 = arith.constant 0 : index
    %38 = vector.load %arg6[%c0_13, %c0_14] : memref<4x1xf32, #tpu.memory_space<vmem>>, vector<4x1xf32>
    %39 = vector.broadcast %38 : vector<4x1xf32> to vector<4x384xf32>
    %40 = arith.addf %37, %39 : vector<4x384xf32>
    %cst_15 = arith.constant 0.000000e+00 : f32
    %41 = vector.broadcast %cst_15 : f32 to vector<4x384xf32>
    %42 = arith.maximumf %40, %41 : vector<4x384xf32>
    %c0_16 = arith.constant 0 : index
    %c0_17 = arith.constant 0 : index
    %43 = vector.load %arg7[%c0_16, %c0_17] : memref<1x384xf32, #tpu.memory_space<vmem>>, vector<1x384xf32>
    %44 = vector.broadcast %43 : vector<1x384xf32> to vector<4x384xf32>
    %45 = arith.mulf %42, %44 : vector<4x384xf32>
    %c0_18 = arith.constant 0 : index
    %c0_19 = arith.constant 0 : index
    %c0_20 = arith.constant 0 : index
    %c0_21 = arith.constant 0 : index
    %46 = vector.load %arg8[%c0_18, %c0_19, %c0_20, %c0_21] : memref<1x1x4x384xf32, #tpu.memory_space<vmem>>, vector<1x1x4x384xf32>
    %47 = vector.shape_cast %46 : vector<1x1x4x384xf32> to vector<4x384xf32>
    %48 = vector.shape_cast %45 : vector<4x384xf32> to vector<1x1x4x384xf32>
    tpu.vector_store %arg8[%c0_18, %c0_19, %c0_20, %c0_21], %48 {strides = array<i32>} : memref<1x1x4x384xf32, #tpu.memory_space<vmem>>, vector<1x1x4x384xf32>,
    return
  }
  func.func @transform_0(%arg0: i32, %arg1: i32) -> (i32, i32, i32, i32) {
    %c0_i32 = arith.constant 0 : i32
    %0 = arith.addi %arg1, %c0_i32 : i32
    %c0_i32_0 = arith.constant 0 : i32
    %c0_i32_1 = arith.constant 0 : i32
    %c0_i32_2 = arith.constant 0 : i32
    return %arg0, %0, %c0_i32_0, %c0_i32_1 : i32, i32, i32, i32
  }
  func.func @transform_1(%arg0: i32, %arg1: i32) -> (i32, i32, i32, i32) {
    %c1_i32 = arith.constant 1 : i32
    %0 = arith.addi %arg1, %c1_i32 : i32
    %c0_i32 = arith.constant 0 : i32
    %c0_i32_0 = arith.constant 0 : i32
    %c0_i32_1 = arith.constant 0 : i32
    return %arg0, %0, %c0_i32, %c0_i32_0 : i32, i32, i32, i32
  }
  func.func @transform_2(%arg0: i32, %arg1: i32) -> (i32, i32, i32, i32) {
    %c2_i32 = arith.constant 2 : i32
    %0 = arith.addi %arg1, %c2_i32 : i32
    %c0_i32 = arith.constant 0 : i32
    %c0_i32_0 = arith.constant 0 : i32
    %c0_i32_1 = arith.constant 0 : i32
    return %arg0, %0, %c0_i32, %c0_i32_0 : i32, i32, i32, i32
  }
  func.func @transform_3(%arg0: i32, %arg1: i32) -> (i32, i32) {
    %c0_i32 = arith.constant 0 : i32
    %c0_i32_0 = arith.constant 0 : i32
    %c0_i32_1 = arith.constant 0 : i32
    return %c0_i32, %c0_i32_0 : i32, i32
  }
  func.func @transform_4(%arg0: i32, %arg1: i32) -> (i32, i32) {
    %c0_i32 = arith.constant 0 : i32
    %c0_i32_0 = arith.constant 0 : i32
    %c0_i32_1 = arith.constant 0 : i32
    return %c0_i32, %c0_i32_0 : i32, i32
  }
  func.func @transform_5(%arg0: i32, %arg1: i32) -> (i32, i32) {
    %c0_i32 = arith.constant 0 : i32
    %c0_i32_0 = arith.constant 0 : i32
    %c0_i32_1 = arith.constant 0 : i32
    return %c0_i32, %c0_i32_0 : i32, i32
  }
  func.func @transform_6(%arg0: i32, %arg1: i32) -> (i32, i32, i32, i32) {
    %c0_i32 = arith.constant 0 : i32
    %c0_i32_0 = arith.constant 0 : i32
    %c0_i32_1 = arith.constant 0 : i32
    return %arg0, %arg1, %c0_i32, %c0_i32_0 : i32, i32, i32, i32
  }
}

module attributes {stable_mosaic.version = 11 : i64} {
  func.func @_conv_stage_kernel(%arg0: i32, %arg1: i32, %arg2: memref<1x1x4x512xf32, #tpu.memory_space<vmem>>, %arg3: memref<1x1x4x512xf32, #tpu.memory_space<vmem>>, %arg4: memref<1x1x4x512xf32, #tpu.memory_space<vmem>>, %arg5: memref<4x108xf32, #tpu.memory_space<vmem>>, %arg6: memref<4x1xf32, #tpu.memory_space<vmem>>, %arg7: memref<1x384xf32, #tpu.memory_space<vmem>>, %arg8: memref<1x1x4x384xf32, #tpu.memory_space<vmem>>, %arg9: memref<1x1x4x384xf32, #tpu.memory_space<vmem>>) attributes {dimension_semantics = [#tpu.dimension_semantics<parallel>, #tpu.dimension_semantics<parallel>], iteration_bounds = array<i64: 2, 16>, scalar_prefetch = 0 : i64, scratch_operands = 0 : i64, tpu.core_type = #tpu.core_type<tc>, window_params = [{transform_indices = @transform_0, window_bounds = array<i64: 1, 1, 4, 512>}, {transform_indices = @transform_1, window_bounds = array<i64: 1, 1, 4, 512>}, {transform_indices = @transform_2, window_bounds = array<i64: 1, 1, 4, 512>}, {pipeline_mode = #tpu.pipeline_mode<synchronous>, transform_indices = @transform_3, window_bounds = array<i64: 4, 108>}, {pipeline_mode = #tpu.pipeline_mode<synchronous>, transform_indices = @transform_4, window_bounds = array<i64: 4, 1>}, {pipeline_mode = #tpu.pipeline_mode<synchronous>, transform_indices = @transform_5, window_bounds = array<i64: 1, 384>}, {transform_indices = @transform_6, window_bounds = array<i64: 1, 1, 4, 384>}, {transform_indices = @transform_7, window_bounds = array<i64: 1, 1, 4, 384>}]} {
    %c0 = arith.constant 0 : index
    %c0_0 = arith.constant 0 : index
    %c0_1 = arith.constant 0 : index
    %c0_2 = arith.constant 0 : index
    %0 = vector.load %arg2[%c0, %c0_0, %c0_1, %c0_2] : memref<1x1x4x512xf32, #tpu.memory_space<vmem>>, vector<1x1x4x512xf32>
    %1 = vector.shape_cast %0 : vector<1x1x4x512xf32> to vector<4x512xf32>
    %2 = vector.extract_strided_slice %1 {offsets = [0, 0], sizes = [4, 384], strides = [1, 1]} : vector<4x512xf32> to vector<4x384xf32>
    %3 = vector.extract_strided_slice %1 {offsets = [0, 1], sizes = [4, 384], strides = [1, 1]} : vector<4x512xf32> to vector<4x384xf32>
    %4 = vector.extract_strided_slice %1 {offsets = [0, 2], sizes = [4, 384], strides = [1, 1]} : vector<4x512xf32> to vector<4x384xf32>
    %5 = vector.extract_strided_slice %1 {offsets = [0, 18], sizes = [4, 384], strides = [1, 1]} : vector<4x512xf32> to vector<4x384xf32>
    %6 = vector.extract_strided_slice %1 {offsets = [0, 19], sizes = [4, 384], strides = [1, 1]} : vector<4x512xf32> to vector<4x384xf32>
    %7 = vector.extract_strided_slice %1 {offsets = [0, 20], sizes = [4, 384], strides = [1, 1]} : vector<4x512xf32> to vector<4x384xf32>
    %8 = vector.extract_strided_slice %1 {offsets = [0, 36], sizes = [4, 384], strides = [1, 1]} : vector<4x512xf32> to vector<4x384xf32>
    %9 = vector.extract_strided_slice %1 {offsets = [0, 37], sizes = [4, 384], strides = [1, 1]} : vector<4x512xf32> to vector<4x384xf32>
    %10 = vector.extract_strided_slice %1 {offsets = [0, 38], sizes = [4, 384], strides = [1, 1]} : vector<4x512xf32> to vector<4x384xf32>
    %c0_3 = arith.constant 0 : index
    %c0_4 = arith.constant 0 : index
    %c0_5 = arith.constant 0 : index
    %c0_6 = arith.constant 0 : index
    %11 = vector.load %arg3[%c0_3, %c0_4, %c0_5, %c0_6] : memref<1x1x4x512xf32, #tpu.memory_space<vmem>>, vector<1x1x4x512xf32>
    %12 = vector.shape_cast %11 : vector<1x1x4x512xf32> to vector<4x512xf32>
    %13 = vector.extract_strided_slice %12 {offsets = [0, 0], sizes = [4, 384], strides = [1, 1]} : vector<4x512xf32> to vector<4x384xf32>
    %14 = vector.extract_strided_slice %12 {offsets = [0, 1], sizes = [4, 384], strides = [1, 1]} : vector<4x512xf32> to vector<4x384xf32>
    %15 = vector.extract_strided_slice %12 {offsets = [0, 2], sizes = [4, 384], strides = [1, 1]} : vector<4x512xf32> to vector<4x384xf32>
    %16 = vector.extract_strided_slice %12 {offsets = [0, 18], sizes = [4, 384], strides = [1, 1]} : vector<4x512xf32> to vector<4x384xf32>
    %17 = vector.extract_strided_slice %12 {offsets = [0, 19], sizes = [4, 384], strides = [1, 1]} : vector<4x512xf32> to vector<4x384xf32>
    %18 = vector.extract_strided_slice %12 {offsets = [0, 20], sizes = [4, 384], strides = [1, 1]} : vector<4x512xf32> to vector<4x384xf32>
    %19 = vector.extract_strided_slice %12 {offsets = [0, 36], sizes = [4, 384], strides = [1, 1]} : vector<4x512xf32> to vector<4x384xf32>
    %20 = vector.extract_strided_slice %12 {offsets = [0, 37], sizes = [4, 384], strides = [1, 1]} : vector<4x512xf32> to vector<4x384xf32>
    %21 = vector.extract_strided_slice %12 {offsets = [0, 38], sizes = [4, 384], strides = [1, 1]} : vector<4x512xf32> to vector<4x384xf32>
    %c0_7 = arith.constant 0 : index
    %c0_8 = arith.constant 0 : index
    %c0_9 = arith.constant 0 : index
    %c0_10 = arith.constant 0 : index
    %22 = vector.load %arg4[%c0_7, %c0_8, %c0_9, %c0_10] : memref<1x1x4x512xf32, #tpu.memory_space<vmem>>, vector<1x1x4x512xf32>
    %23 = vector.shape_cast %22 : vector<1x1x4x512xf32> to vector<4x512xf32>
    %24 = vector.extract_strided_slice %23 {offsets = [0, 0], sizes = [4, 384], strides = [1, 1]} : vector<4x512xf32> to vector<4x384xf32>
    %25 = vector.extract_strided_slice %23 {offsets = [0, 1], sizes = [4, 384], strides = [1, 1]} : vector<4x512xf32> to vector<4x384xf32>
    %26 = vector.extract_strided_slice %23 {offsets = [0, 2], sizes = [4, 384], strides = [1, 1]} : vector<4x512xf32> to vector<4x384xf32>
    %27 = vector.extract_strided_slice %23 {offsets = [0, 18], sizes = [4, 384], strides = [1, 1]} : vector<4x512xf32> to vector<4x384xf32>
    %28 = vector.extract_strided_slice %23 {offsets = [0, 19], sizes = [4, 384], strides = [1, 1]} : vector<4x512xf32> to vector<4x384xf32>
    %29 = vector.extract_strided_slice %23 {offsets = [0, 20], sizes = [4, 384], strides = [1, 1]} : vector<4x512xf32> to vector<4x384xf32>
    %30 = vector.extract_strided_slice %23 {offsets = [0, 36], sizes = [4, 384], strides = [1, 1]} : vector<4x512xf32> to vector<4x384xf32>
    %31 = vector.extract_strided_slice %23 {offsets = [0, 37], sizes = [4, 384], strides = [1, 1]} : vector<4x512xf32> to vector<4x384xf32>
    %32 = vector.extract_strided_slice %23 {offsets = [0, 38], sizes = [4, 384], strides = [1, 1]} : vector<4x512xf32> to vector<4x384xf32>
    %33 = tpu.concatenate %2, %3, %4, %5, %6, %7, %8, %9, %10, %13, %14, %15, %16, %17, %18, %19 in 0 : vector<4x384xf32>, vector<4x384xf32>, vector<4x384xf32>, vector<4x384xf32>, vector<4x384xf32>, vector<4x384xf32>, vector<4x384xf32>, vector<4x384xf32>, vector<4x384xf32>, vector<4x384xf32>, vector<4x384xf32>, vector<4x384xf32>, vector<4x384xf32>, vector<4x384xf32>, vector<4x384xf32>, vector<4x384xf32> -> vector<64x384xf32>
    %34 = tpu.concatenate %20, %21, %24, %25, %26, %27, %28, %29, %30, %31, %32 in 0 : vector<4x384xf32>, vector<4x384xf32>, vector<4x384xf32>, vector<4x384xf32>, vector<4x384xf32>, vector<4x384xf32>, vector<4x384xf32>, vector<4x384xf32>, vector<4x384xf32>, vector<4x384xf32>, vector<4x384xf32> -> vector<44x384xf32>
    %35 = tpu.concatenate %33, %34 in 0 : vector<64x384xf32>, vector<44x384xf32> -> vector<108x384xf32>
    %c0_11 = arith.constant 0 : index
    %c0_12 = arith.constant 0 : index
    %36 = vector.load %arg5[%c0_11, %c0_12] : memref<4x108xf32, #tpu.memory_space<vmem>>, vector<4x108xf32>
    %cst = arith.constant dense<0.000000e+00> : vector<4x384xf32>
    %37 = tpu.matmul %36, %35, %cst {dimension_numbers = #tpu.dot_dimension_numbers<[1], [0], [0], [1], [0, 0, 1, 1], [], []>} : vector<4x108xf32>, vector<108x384xf32>, vector<4x384xf32> -> vector<4x384xf32>
    %c0_13 = arith.constant 0 : index
    %c0_14 = arith.constant 0 : index
    %38 = vector.load %arg6[%c0_13, %c0_14] : memref<4x1xf32, #tpu.memory_space<vmem>>, vector<4x1xf32>
    %39 = vector.broadcast %38 : vector<4x1xf32> to vector<4x384xf32>
    %40 = arith.addf %37, %39 : vector<4x384xf32>
    %c0_15 = arith.constant 0 : index
    %c0_16 = arith.constant 0 : index
    %c0_17 = arith.constant 0 : index
    %c0_18 = arith.constant 0 : index
    %41 = vector.load %arg8[%c0_15, %c0_16, %c0_17, %c0_18] : memref<1x1x4x384xf32, #tpu.memory_space<vmem>>, vector<1x1x4x384xf32>
    %42 = vector.shape_cast %41 : vector<1x1x4x384xf32> to vector<4x384xf32>
    %43 = arith.addf %40, %42 : vector<4x384xf32>
    %cst_19 = arith.constant 0.000000e+00 : f32
    %44 = vector.broadcast %cst_19 : f32 to vector<4x384xf32>
    %45 = arith.maximumf %43, %44 : vector<4x384xf32>
    %c0_20 = arith.constant 0 : index
    %c0_21 = arith.constant 0 : index
    %46 = vector.load %arg7[%c0_20, %c0_21] : memref<1x384xf32, #tpu.memory_space<vmem>>, vector<1x384xf32>
    %47 = vector.broadcast %46 : vector<1x384xf32> to vector<4x384xf32>
    %48 = arith.mulf %45, %47 : vector<4x384xf32>
    %c0_22 = arith.constant 0 : index
    %c0_23 = arith.constant 0 : index
    %c0_24 = arith.constant 0 : index
    %c0_25 = arith.constant 0 : index
    %49 = vector.load %arg9[%c0_22, %c0_23, %c0_24, %c0_25] : memref<1x1x4x384xf32, #tpu.memory_space<vmem>>, vector<1x1x4x384xf32>
    %50 = vector.shape_cast %49 : vector<1x1x4x384xf32> to vector<4x384xf32>
    %51 = vector.shape_cast %48 : vector<4x384xf32> to vector<1x1x4x384xf32>
    tpu.vector_store %arg9[%c0_22, %c0_23, %c0_24, %c0_25], %51 {strides = array<i32>} : memref<1x1x4x384xf32, #tpu.memory_space<vmem>>, vector<1x1x4x384xf32>,
    return
  }
  func.func @transform_0(%arg0: i32, %arg1: i32) -> (i32, i32, i32, i32) {
    %c0_i32 = arith.constant 0 : i32
    %0 = arith.addi %arg1, %c0_i32 : i32
    %c0_i32_0 = arith.constant 0 : i32
    %c0_i32_1 = arith.constant 0 : i32
    %c0_i32_2 = arith.constant 0 : i32
    return %arg0, %0, %c0_i32_0, %c0_i32_1 : i32, i32, i32, i32
  }
  func.func @transform_1(%arg0: i32, %arg1: i32) -> (i32, i32, i32, i32) {
    %c1_i32 = arith.constant 1 : i32
    %0 = arith.addi %arg1, %c1_i32 : i32
    %c0_i32 = arith.constant 0 : i32
    %c0_i32_0 = arith.constant 0 : i32
    %c0_i32_1 = arith.constant 0 : i32
    return %arg0, %0, %c0_i32, %c0_i32_0 : i32, i32, i32, i32
  }
  func.func @transform_2(%arg0: i32, %arg1: i32) -> (i32, i32, i32, i32) {
    %c2_i32 = arith.constant 2 : i32
    %0 = arith.addi %arg1, %c2_i32 : i32
    %c0_i32 = arith.constant 0 : i32
    %c0_i32_0 = arith.constant 0 : i32
    %c0_i32_1 = arith.constant 0 : i32
    return %arg0, %0, %c0_i32, %c0_i32_0 : i32, i32, i32, i32
  }
  func.func @transform_3(%arg0: i32, %arg1: i32) -> (i32, i32) {
    %c0_i32 = arith.constant 0 : i32
    %c0_i32_0 = arith.constant 0 : i32
    %c0_i32_1 = arith.constant 0 : i32
    return %c0_i32, %c0_i32_0 : i32, i32
  }
  func.func @transform_4(%arg0: i32, %arg1: i32) -> (i32, i32) {
    %c0_i32 = arith.constant 0 : i32
    %c0_i32_0 = arith.constant 0 : i32
    %c0_i32_1 = arith.constant 0 : i32
    return %c0_i32, %c0_i32_0 : i32, i32
  }
  func.func @transform_5(%arg0: i32, %arg1: i32) -> (i32, i32) {
    %c0_i32 = arith.constant 0 : i32
    %c0_i32_0 = arith.constant 0 : i32
    %c0_i32_1 = arith.constant 0 : i32
    return %c0_i32, %c0_i32_0 : i32, i32
  }
  func.func @transform_6(%arg0: i32, %arg1: i32) -> (i32, i32, i32, i32) {
    %c0_i32 = arith.constant 0 : i32
    %c0_i32_0 = arith.constant 0 : i32
    %c0_i32_1 = arith.constant 0 : i32
    return %arg0, %arg1, %c0_i32, %c0_i32_0 : i32, i32, i32, i32
  }
  func.func @transform_7(%arg0: i32, %arg1: i32) -> (i32, i32, i32, i32) {
    %c0_i32 = arith.constant 0 : i32
    %c0_i32_0 = arith.constant 0 : i32
    %c0_i32_1 = arith.constant 0 : i32
    return %arg0, %arg1, %c0_i32, %c0_i32_0 : i32, i32, i32, i32
  }
}

</mosaic_0001>

<bundles_post_ra>
// kernel: residual_conv_block.2
= control target key start
LH: loop header
LB: loop body
LE: loop exit
PB: predicated region body
PF: predicated region fallthrough
CT: control target
= control target key end

     0   :  { %s1774_s21 = smov 0   ;;  %s1776_s22 = smov 0   ;;  %s2250_s0 = inlined_call_operand.vmem [shape: f32[2,18,4,512], index: 0, kind: input, shape index: {}, may-alias: {0,1,2}]   ;;  %s2251_s1 = inlined_call_operand.vmem [shape: f32[2,18,4,512], index: 1, kind: input, shape index: {}, may-alias: {0,1,2}]   ;;  %s2252_s2 = inlined_call_operand.vmem [shape: f32[2,18,4,512], index: 2, kind: input, shape index: {}, may-alias: {0,1,2}]   ;;  %s2253_s3 = inlined_call_operand.vmem [shape: f32[4,108], index: 3, kind: input, shape index: {}]   ;;  %s2254_s4 = inlined_call_operand.vmem [shape: f32[4,1], index: 4, kind: input, shape index: {}]   ;;  %s2255_s5 = inlined_call_operand.vmem [shape: f32[1,384], index: 5, kind: input, shape index: {}]   ;;  %s2256_s6 = inlined_call_operand.vmem [shape: f32[2,16,4,384], index: 6, kind: output, shape index: {}]  }
   0x1   :  { %s1778_s23 = smov 0   ;;  %s1780_s24 = smov 0  }
   0x2   :  { %s1782_s25 = smov 0  }
   0x3 LB: > { %s25_s26 = sadd.s32 1, %s1709_s23  ;;  %s28_s27 = sadd.s32 1, %s1713_s24  ;;  %s1717_s25 = sphi %s1782_s25, %s16_s25   ;;  %s1713_s24 = sphi %s1780_s24, %s2262_s24   ;;  %s1709_s23 = sphi %s1778_s23, %s2261_s23   ;;  %s1705_s22 = sphi %s1776_s22, %s2260_s22   ;;  %s1701_s21 = sphi %s1774_s21, %s2259_s21  }
   0x4   : > { %p26_p0 = scmp.ge.s32.totalorder %s25_s26, 16  ;;  %p1209_p1 = scmp.ge.s32.totalorder %s1717_s25, 1 }
   0x5   : > { %p272_p2 = scmp.lt.s32.totalorder %s1717_s25, 33 }
   0x6   : > { %s2264_s26 = smov (%p26_p0, %s25_s26), 0  ;;  %s2266_s27 = smov (!%p26_p0, %s28_s27), %s1713_s24 }
   0x7   : > { %p273_p3 = pnand %p1209_p1, %p272_p2  ;;  %p30_p4 = scmp.ge.s32.totalorder %s2266_s27, 2 }
   0x8   : > { %p330_p5 = scmp.lt.s32.totalorder (!%p273_p3), %s1705_s22, 1  ;;  %s350_s28 = sadd.s32 (!%p273_p3), 2, %s1701_s21  ;;  %v1733_v31 = vmov (!%p273_p3), 0.0|0.0   ;;  %vm642_vm0 = vcmask (!%p273_p3), 302080   ;;  %vm659_vm1 = vcmask (!%p273_p3), 293888   ;;  %vm390_vm2 = vcmask (!%p273_p3), 1039360  }
   0x9   : > { %s2268_s27 = smov (%p30_p4, %s2266_s27), 0  ;;  %276 = sbr.rel (%p273_p3) target bundleno = 540 (0x21c), region = 44 }
   0xa   : > { %p353_p6 = scmp.lt.s32.totalorder (!%p273_p3), %s350_s28, 17  ;;  %s339_s30 = sadd.s32 (!%p273_p3), 1, %s1701_s21  ;;  %1300 = vmatprep.subr.bf16.mxu1 (!%p273_p3), %v1733_v31  ;;  %vm595_vm3 = vcmask (!%p273_p3), 1043456   ;;  %vm676_vm4 = vcmask (!%p273_p3), 285696   ;;  %vm692_vm5 = vcmask (!%p273_p3), 154624   ;;  %vm708_vm6 = vcmask (!%p273_p3), 146432  }
   0xb   : > { %p342_p7 = scmp.lt.s32.totalorder (!%p273_p3), %s339_s30, 17  ;;  %s1719_s13 = smov (!%p273_p3), 37   ;;  %vm724_vm7 = vcmask (!%p273_p3), 138240   ;;  %vm740_vm8 = vcmask (!%p273_p3), 7168   ;;  %vm406_vm9 = vcmask (!%p273_p3), 1031168   ;;  %vm421_vm10 = vcmask (!%p273_p3), 900096  }
   0xc   : > { %p332_p8 = scmp.lt.s32.totalorder (!%p273_p3), %s1701_s21, 17  ;;  %s1720_s20 = smov (!%p273_p3), 127   ;;  %vm451_vm11 = vcmask (!%p273_p3), 883712   ;;  %vm436_vm12 = vcmask (!%p273_p3), 891904   ;;  %vm481_vm13 = vcmask (!%p273_p3), 744448   ;;  %vm1736_vm14 = vmmov (!%p273_p3), 0  }
   0xd   : > { %s1726_s17 = smov (!%p273_p3), 1   ;;  %s1728_s18 = smov (!%p273_p3), 110   ;;  %vm466_vm15 = vcmask (!%p273_p3), 752640  }
   0xe   : > { %p363_p9 = scmp.lt.s32.totalorder (!%p273_p3), %s1701_s21, 15 }
  0x10   : > { %s2270_s22 = smov (!%p330_p5, %s1705_s22), 1  ;;  %s2272_s28 = smov (!%p353_p6, %s350_s28), 17 }
  0x11   : > { %s1810_s29 = smul.u32 72, %s2270_s22  ;;  %s1214_s7 = sshll.u32 %s2272_s28, 2 }
  0x12   : > { %s2274_s30 = smov (!%p342_p7, %s339_s30), 17  ;;  %s1721_s28 = smov 36  }
  0x13   : > { %s357_s8 = sadd.s32 %s1810_s29, %s1214_s7  ;;  %s1212_s14 = sshll.u32 %s2274_s30, 2 }
  0x14   : > { %s1215_s9 = sshll.u32 %s357_s8, 2  ;;  %s346_s15 = sadd.s32 %s1810_s29, %s1212_s14 }
  0x15   : > { %s359_s12 = scalar_lea.vmem %s2252_s2, %s1215_s9  ;;  %s1213_s16 = sshll.u32 %s346_s15, 2 }
  0x16   : > { %v1817_v0 = vld [vmem:[%s359_s12 + $0x8] sm:$0xff]  ;;  %v1819_v1 = vld [vmem:[%s359_s12] sm:$0xff]  ;;  %s348_s19 = scalar_lea.vmem %s2251_s1, %s1213_s16  ;;  %s1722_s7 = smov 35  }
  0x17   : > { %640 = vrot.lane.b32.xlu1 %v1817_v0, %s1719_s13  ;;  %v635_v2 = vcombine.high %v1819_v1, %v1819_v1  ;;  %v1826_v3 = vcombine.low %v1817_v0, %v1817_v0  ;;  %v667_v6 = vcombine.high %v1817_v0, %v1817_v0  ;;  %v1837_v7 = vld [vmem:[%s348_s19] sm:$0xff]  ;;  %v1839_v8 = vld [vmem:[%s348_s19 + $0x8] sm:$0xff]  ;;  %v1857_v13 = vcombine.low %v1819_v1, %v1819_v1  ;;  %s333_s30 = scalar_select %p332_p8, %s1701_s21, 17 }
  0x18   : > { %v1385_v9 = vpack.i.bf16 %v1839_v8, %v1837_v7  ;;  %v1846_v10 = vcombine.low %v1837_v7, %v1837_v7  ;;  %v1850_v11 = vcombine.low %v1839_v8, %v1839_v8  ;;  %s1723_s9 = smov 19   ;;  %s1724_s12 = smov 18   ;;  %v1901_v28 = vcombine.high %v1837_v7, %v1837_v7 }
  0x19   : > { %v1395_v4 = vpack.i.bf16 %v635_v2, %v1819_v1  ;;  %v1405_v5 = vpack.i.bf16 %v1817_v0, %v1826_v3  ;;  %v1415_v14 = vpack.i.bf16 %v667_v6, %v1817_v0  ;;  %v1400_v15 = vpack.i.bf16 %v1819_v1, %v1857_v13  ;;  %s1210_s8 = sshll.u32 %s333_s30, 2  ;;  %s1725_s16 = smov 17  }
  0x1a   : > { %1386 = vrot.lane.b32.xlu0 %v1385_v9, %s1720_s20  ;;  %v1390_v12 = vpack.i.bf16 %v1846_v10, %v1850_v11  ;;  %s336_s10 = sadd.s32 %s1810_s29, %s1210_s8  ;;  %v1465_v17 = vpack.i.bf16 %v1819_v1, %v667_v6  ;;  %v1460_v22 = vpack.i.bf16 %v1817_v0, %v635_v2  ;;  %s1727_s29 = smov 126   ;;  %v510_v29 = vcombine.high %v1839_v8, %v1839_v8 }
  0x1b   : > { %1396 = vrot.lane.b32.xlu1 %v1395_v4, %s1719_s13  ;;  %s1211_s11 = sshll.u32 %s336_s10, 2  ;;  %s1729_s19 = smov 108   ;;  %v1565_v32 = vpack.i.bf16 %v1839_v8, %v1901_v28  ;;  %v1550_v33 = vpack.i.bf16 %v1850_v11, %v1837_v7  ;;  %v1560_v34 = vpack.i.bf16 %v1839_v8, %v1846_v10 }
  0x1c   : > { %s338_s15 = scalar_lea.vmem %s2250_s0, %s1211_s11  ;;  %s1731_s30 = smov 109   ;;  %v1545_v30 = vpack.i.bf16 %v510_v29, %v1901_v28  ;;  %v1585_v35 = vpack.i.bf16 %v510_v29, %v1837_v7 }
  0x1d   : > { %v1868_v16 = vld [vmem:[%s338_s15] sm:$0xff]  ;;  %v1875_v19 = vld [vmem:[%s338_s15 + $0x8] sm:$0xff]  ;;  %s1734_s8 = smov 90   ;;  %s2276_s21 = smov (!%p363_p9, %s1701_s21), 15 }
  0x1e   : > { %1391 = vrot.lane.b32.xlu0 %v1390_v12, %s1720_s20  ;;  %v1873_v18 = vcombine.high %v1868_v16, %v1868_v16  ;;  %v380_v21 = vcombine.low %v1868_v16, %v1868_v16  ;;  %v381_v23 = vcombine.low %v1875_v19, %v1875_v19  ;;  %v397_v26 = vcombine.high %v1875_v19, %v1875_v19  ;;  %s1324_s13 = smul.u32 48, %s2270_s22 }
  0x1f   : > { %1406 = vrot.lane.b32.xlu1 %v1405_v5, %s1721_s28 }
  0x20   : > { %v1475_v20 = vpack.i.bf16 %v1875_v19, %v1873_v18  ;;  %v1485_v24 = vpack.i.bf16 %v1875_v19, %v380_v21  ;;  %v1470_v25 = vpack.i.bf16 %v381_v23, %v1868_v16  ;;  %v1490_v27 = vpack.i.bf16 %v397_v26, %v1868_v16 }
  0x22   : > { %1401 = vrot.lane.b32.xlu0 %v1400_v15, %s1721_s28  ;;  %s1730_s28 = smov 91  }
  0x23   : > { %1416 = vrot.lane.b32.xlu1 %v1415_v14, %s1722_s7 }
  0x26   : > { %1411 = vrot.lane.b32.xlu0 %v1395_v4, %s1722_s7  ;;  %s1732_s7 = smov 92  }
  0x27   : > { %1426 = vrot.lane.b32.xlu1 %v1405_v5, %s1723_s9 }
  0x2a   : > { %1421 = vrot.lane.b32.xlu0 %v1400_v15, %s1723_s9 }
  0x2b   : > { %1436 = vrot.lane.b32.xlu1 %v1415_v14, %s1724_s12 }
  0x2e   : > { %1431 = vrot.lane.b32.xlu0 %v1395_v4, %s1724_s12  ;;  %s1323_s12 = smul.u32 3, %s2276_s21 }
  0x2f   : > { %1446 = vrot.lane.b32.xlu1 %v1405_v5, %s1725_s16 }
  0x32   : > { %1441 = vrot.lane.b32.xlu0 %v1400_v15, %s1725_s16  ;;  %s367_s16 = sadd.s32 %s1324_s13, %s1323_s12 }
  0x33   : > { %1456 = vrot.lane.b32.xlu1 %v1415_v14, %s1726_s17  ;;  %s1216_s21 = sshll.u32 %s367_s16, 2 }
  0x36   : > { %1451 = vrot.lane.b32.xlu0 %v1395_v4, %s1726_s17 }
  0x37   : > { %1466 = vrot.lane.b32.xlu1 %v1465_v17, %s1720_s20 }
  0x3a   : > { %1461 = vrot.lane.b32.xlu0 %v1460_v22, %s1720_s20 }
  0x3b   : > { %1476 = vrot.lane.b32.xlu1 %v1475_v20, %s1727_s29 }
  0x3e   : > { %1471 = vrot.lane.b32.xlu0 %v1470_v25, %s1720_s20 }
  0x3f   : > { %1486 = vrot.lane.b32.xlu1 %v1485_v24, %s1720_s20 }
  0x42   : > { %1481 = vrot.lane.b32.xlu0 %v1470_v25, %s1728_s18 }
  0x43   : > { %1496 = vrot.lane.b32.xlu1 %v1485_v24, %s1728_s18 }
  0x46   : > { %1491 = vrot.lane.b32.xlu0 %v1490_v27, %s1727_s29 }
  0x47   : > { %1506 = vrot.lane.b32.xlu1 %v1470_v25, %s1729_s19 }
  0x4a   : > { %1501 = vrot.lane.b32.xlu0 %v1475_v20, %s1731_s30 }
  0x4b   : > { %1516 = vrot.lane.b32.xlu1 %v1470_v25, %s1730_s28 }
  0x4e   : > { %1511 = vrot.lane.b32.xlu0 %v1475_v20, %s1732_s7 }
  0x4f   : > { %1526 = vrot.lane.b32.xlu1 %v1485_v24, %s1729_s19 }
  0x52   : > { %1521 = vrot.lane.b32.xlu0 %v1490_v27, %s1731_s30 }
  0x53   : > { %1536 = vrot.lane.b32.xlu1 %v1485_v24, %s1730_s28 }
  0x56   : > { %1531 = vrot.lane.b32.xlu0 %v1490_v27, %s1732_s7 }
  0x57   : > { %1546 = vrot.lane.b32.xlu1 %v1545_v30, %s1720_s20 }
  0x5a   : > { %1541 = vrot.lane.b32.xlu0 %v1475_v20, %s1734_s8 }
  0x5b   : > { %1556 = vrot.lane.b32.xlu1 %v1490_v27, %s1734_s8 }
  0x5e   : > { %1551 = vrot.lane.b32.xlu0 %v1550_v33, %s1727_s29 }
  0x5f   : > { %1566 = vrot.lane.b32.xlu1 %v1565_v32, %s1728_s18 }
  0x62   : > { %1561 = vrot.lane.b32.xlu0 %v1560_v34, %s1727_s29  ;;  %s369_s29 = scalar_lea.vmem %s2256_s6, %s1216_s21 }
  0x63   : > { %1576 = vrot.lane.b32.xlu1 %v1565_v32, %s1729_s19 }
  0x66   : > { %1571 = vrot.lane.b32.xlu0 %v1550_v33, %s1731_s30 }
  0x67   : > { %1586 = vrot.lane.b32.xlu1 %v1585_v35, %s1728_s18 }
  0x6a   : > { %1581 = vrot.lane.b32.xlu0 %v1550_v33, %s1732_s7 }
  0x6b   : > { %1596 = vrot.lane.b32.xlu1 %v1585_v35, %s1729_s19 }
  0x6e   : > { %1591 = vrot.lane.b32.xlu0 %v1560_v34, %s1731_s30 }
  0x72   : > { %1601 = vrot.lane.b32.xlu0 %v1560_v34, %s1732_s7 }
  0x89   : > { %v641_v36 = vpop.permute.xlu1 %640 }
  0x8c   : > { %v1387_v38 = vpop.permute.xlu0 %1386 }
  0x8d   : > { %v1397_v37 = vpop.permute.xlu1 %1396  ;;  %v1935_v50 = vunpack.i.h.bf16 %v1387_v38  ;;  %v1937_v56 = vunpack.i.l.bf16 %v1387_v38 }
  0x8e   : > { %v1399_v51 = vunpack.i.h.bf16 %v1397_v37  ;;  %v1398_v52 = vunpack.i.l.bf16 %v1397_v37 }
  0x8f   : > { %v1950_v2 = vsel %vm595_vm3, %v510_v29, %v1935_v50 }
  0x90   : > { %v1392_v40 = vpop.permute.xlu0 %1391  ;;  %v644_v61 = vsel %vm642_vm0, %v1399_v51, %v641_v36  ;;  %v643_v62 = vsel %vm642_vm0, %v1398_v52, %v1399_v51  ;;  %vm496_vm0 = vcmask 736256  }
  0x91   : > { %v1407_v39 = vpop.permute.xlu1 %1406  ;;  %v1393_v53 = vunpack.i.l.bf16 %v1392_v40  ;;  %v1394_v57 = vunpack.i.h.bf16 %v1392_v40 }
  0x92   : > { %v1409_v46 = vunpack.i.h.bf16 %v1407_v39  ;;  %v1408_v47 = vunpack.i.l.bf16 %v1407_v39 }
  0x93   : > { %v627_v63 = vsel %vm390_vm2, %v1937_v56, %v1393_v53  ;;  %v628_v4 = vsel %vm390_vm2, %v1393_v53, %v1935_v50  ;;  %v626_v12 = vsel %vm390_vm2, %v1394_v57, %v1937_v56 }
  0x94   : > { %v1402_v42 = vpop.permute.xlu0 %1401  ;;  %v662_v58 = vsel %vm659_vm1, %v1408_v47, %v1409_v46  ;;  %v762_v25 = vsel %vm595_vm3, %v1901_v28, %v627_v63  ;;  %v763_v27 = vsel %vm595_vm3, %v1839_v8, %v628_v4  ;;  %v761_v38 = vsel %vm595_vm3, %v1837_v7, %v626_v12 }
  0x95   : > { %v1923_v41 = vpop.permute.xlu1 %1416  ;;  %v1404_v54 = vunpack.i.h.bf16 %v1402_v42  ;;  %v1403_v55 = vunpack.i.l.bf16 %v1402_v42  ;;  %v1957_v9 = vsel %vm595_vm3, %v641_v36, %v662_v58  ;;  %v1615_v42 = vpack.i.bf16 %v763_v27, %v762_v25 }
  0x96   : > { %v1419_v15 = vunpack.i.h.bf16 %v1923_v41  ;;  %v1418_v17 = vunpack.i.l.bf16 %v1923_v41  ;;  %v1630_v39 = vpack.i.bf16 %v1957_v9, %v1950_v2 }
  0x97   : > { %v660_v5 = vsel %vm659_vm1, %v1403_v55, %v1404_v54  ;;  %v661_v14 = vsel %vm659_vm1, %v1404_v54, %v1408_v47  ;;  %v765_v29 = vsel %vm595_vm3, %v1398_v52, %v1403_v55  ;;  %vm1738_vm1 = vmmov 1  }
  0x98   : > { %v1927_v44 = vpop.permute.xlu0 %1411  ;;  %v1975_v30 = vsel %vm595_vm3, %v643_v62, %v660_v5  ;;  %v1983_v28 = vsel %vm595_vm3, %v644_v61, %v661_v14  ;;  %v1986_v35 = vsel %vm676_vm4, %v1418_v17, %v1419_v15 }
  0x99   : > { %v1925_v43 = vpop.permute.xlu1 %1426  ;;  %v1413_v22 = vunpack.i.l.bf16 %v1927_v44  ;;  %v1414_v26 = vunpack.i.h.bf16 %v1927_v44  ;;  %v1625_v44 = vpack.i.bf16 %v765_v29, %v761_v38  ;;  %v1620_v51 = vpack.i.bf16 %v1983_v28, %v1975_v30 }
  0x9a   : > { %v1429_v40 = vunpack.i.h.bf16 %v1925_v43  ;;  %v1428_v41 = vunpack.i.l.bf16 %v1925_v43 }
  0x9b   : > { %v678_v46 = vsel %vm676_vm4, %v1414_v26, %v1418_v17  ;;  %v677_v52 = vsel %vm676_vm4, %v1413_v22, %v1414_v26 }
  0x9c   : > { %v1931_v48 = vpop.permute.xlu0 %1421 }
  0x9d   : > { %v1929_v45 = vpop.permute.xlu1 %1436  ;;  %v1423_v6 = vunpack.i.l.bf16 %v1931_v48  ;;  %v1424_v32 = vunpack.i.h.bf16 %v1931_v48 }
  0x9e   : > { %v1439_v47 = vunpack.i.h.bf16 %v1929_v45  ;;  %v1438_v48 = vunpack.i.l.bf16 %v1929_v45 }
  0x9f   : > { %v769_v33 = vsel %vm595_vm3, %v1413_v22, %v1423_v6  ;;  %v694_v53 = vsel %vm692_vm5, %v1424_v32, %v1428_v41  ;;  %v693_v54 = vsel %vm692_vm5, %v1423_v6, %v1424_v32 }
  0xa0   : > { %v1940_v59 = vpop.permute.xlu0 %1431  ;;  %v711_v6 = vsel %vm708_vm6, %v1438_v48, %v1439_v47  ;;  %v771_v17 = vsel %vm595_vm3, %v678_v46, %v694_v53 }
  0xa1   : > { %v1933_v49 = vpop.permute.xlu1 %1446  ;;  %v1433_v23 = vunpack.i.l.bf16 %v1940_v59  ;;  %v1434_v15 = vunpack.i.h.bf16 %v1940_v59 }
  0xa2   : > { %v1449_v55 = vunpack.i.h.bf16 %v1933_v49  ;;  %v1448_v57 = vunpack.i.l.bf16 %v1933_v49  ;;  %v770_v49 = vsel %vm595_vm3, %v677_v52, %v693_v54 }
  0xa3   : > { %v709_v46 = vsel %vm708_vm6, %v1433_v23, %v1434_v15 }
  0xa4   : > { %v1442_v20 = vpop.permute.xlu0 %1441  ;;  %v727_v27 = vsel %vm724_vm7, %v1448_v57, %v1449_v55 }
  0xa5   : > { %v1942_v60 = vpop.permute.xlu1 %1456  ;;  %v1443_v24 = vunpack.i.l.bf16 %v1442_v20  ;;  %v1444_v58 = vunpack.i.h.bf16 %v1442_v20 }
  0xa6   : > { %v1458_v45 = vunpack.i.l.bf16 %v1942_v60 }
  0xa7   : > { %v773_v34 = vsel %vm595_vm3, %v1433_v23, %v1443_v24  ;;  %v726_v29 = vsel %vm724_vm7, %v1444_v58, %v1448_v57  ;;  %v725_v30 = vsel %vm724_vm7, %v1443_v24, %v1444_v58  ;;  %v1635_v24 = vpack.i.bf16 %v771_v17, %v770_v49 }
  0xa8   : > { %v1988_v8 = vpop.permute.xlu0 %1451  ;;  %v1605_v36 = vpack.i.bf16 %v773_v34, %v769_v33  ;;  %v774_v53 = vsel %vm595_vm3, %v709_v46, %v725_v30 }
  0xa9   : > { %v1964_v21 = vpop.permute.xlu1 %1466  ;;  %v1454_v4 = vunpack.i.h.bf16 %v1988_v8  ;;  %v1453_v5 = vunpack.i.l.bf16 %v1988_v8 }
  0xaa   : > { %1606 = vrot.lane.b32.xlu1 %v1605_v36, %s1730_s28  ;;  %v1468_v61 = vunpack.i.l.bf16 %v1964_v21  ;;  %v1469_v47 = vunpack.i.h.bf16 %v1964_v21 }
  0xab   : > { %v742_v28 = vsel %vm740_vm8, %v1454_v4, %v1458_v45  ;;  %v741_v8 = vsel %vm740_vm8, %v1453_v5, %v1454_v4 }
  0xac   : > { %v1462_v62 = vpop.permute.xlu0 %1461  ;;  %v778_v55 = vsel %vm595_vm3, %v741_v8, %v1819_v1 }
  0xad   : > { %v1990_v37 = vpop.permute.xlu1 %1476  ;;  %v1464_v12 = vunpack.i.h.bf16 %v1462_v62  ;;  %v1463_v14 = vunpack.i.l.bf16 %v1462_v62 }
  0xae   : > { %1616 = vrot.lane.b32.xlu1 %v1615_v42, %s1730_s28  ;;  %v1479_v20 = vunpack.i.h.bf16 %v1990_v37  ;;  %v1478_v22 = vunpack.i.l.bf16 %v1990_v37  ;;  %v710_v42 = vsel %vm708_vm6, %v1434_v15, %v1438_v48 }
  0xaf   : > { %v759_v25 = vsel %vm390_vm2, %v1463_v14, %v1464_v12  ;;  %v760_v26 = vsel %vm390_vm2, %v1464_v12, %v1468_v61  ;;  %v775_v54 = vsel %vm595_vm3, %v710_v42, %v726_v29  ;;  %v758_v49 = vsel %vm390_vm2, %v1469_v47, %v1463_v14 }
  0xb0   : > { %v1472_v32 = vpop.permute.xlu0 %1471  ;;  %v1610_v33 = vpack.i.bf16 %v760_v26, %v759_v25  ;;  %v408_v59 = vsel %vm406_vm9, %v1478_v22, %v1479_v20  ;;  %v1640_v1 = vpack.i.bf16 %v775_v54, %v774_v53  ;;  %v1735_v47 = vmov 0.0  }
  0xb1   : > { %v2013_v63 = vpop.permute.xlu1 %1486  ;;  %v1474_v36 = vunpack.i.h.bf16 %v1472_v32  ;;  %v1473_v38 = vunpack.i.l.bf16 %v1472_v32  ;;  %962 = vmatprep.mubr.f32.mxu0 %v1735_v47  ;;  %1267 = vmatprep.mubr.msk.f32.mxu1 %vm1736_vm14, %v1735_v47 }
  0xb2   : > { %1611 = vrot.lane.b32.xlu0 %v1610_v33, %s1730_s28  ;;  %1626 = vrot.lane.b32.xlu1 %v1625_v44, %s1730_s28  ;;  %v1488_v52 = vunpack.i.l.bf16 %v2013_v63  ;;  %v1489_v23 = vunpack.i.h.bf16 %v2013_v63  ;;  %v779_v44 = vsel %vm595_vm3, %v742_v28, %v1826_v3  ;;  %v695_v63 = vsel %vm692_vm5, %v1428_v41, %v1429_v40 }
  0xb3   : > { %v392_v58 = vsel %vm390_vm2, %v1473_v38, %v1474_v36  ;;  %v776_v3 = vsel %vm595_vm3, %v711_v6, %v727_v27  ;;  %v1650_v29 = vpack.i.bf16 %v779_v44, %v778_v55  ;;  %v777_v40 = vsel %vm595_vm3, %v1453_v5, %v1857_v13 }
  0xb4   : > { %v1482_v48 = vpop.permute.xlu0 %1481  ;;  %v597_v25 = vsel %vm595_vm3, %v1873_v18, %v392_v58  ;;  %v391_v26 = vsel %vm390_vm2, %v1488_v52, %v1473_v38  ;;  %v393_v6 = vsel %vm390_vm2, %v1474_v36, %v1489_v23  ;;  %v1459_v18 = vunpack.i.h.bf16 %v1942_v60 }
  0xb5   : > { %v1497_v34 = vpop.permute.xlu1 %1496  ;;  %v1484_v62 = vunpack.i.h.bf16 %v1482_v48  ;;  %v1483_v4 = vunpack.i.l.bf16 %v1482_v48  ;;  %v1655_v13 = vpack.i.bf16 %v758_v49, %v777_v40  ;;  %v596_v33 = vsel %vm595_vm3, %v1868_v16, %v391_v26 }
  0xb6   : > { %v1499_v12 = vunpack.i.h.bf16 %v1497_v34  ;;  %v1498_v15 = vunpack.i.l.bf16 %v1497_v34  ;;  %1621 = vrot.lane.b32.xlu0 %v1620_v51, %s1730_s28  ;;  %1636 = vrot.lane.b32.xlu1 %v1635_v24, %s1730_s28  ;;  %v598_v2 = vsel %vm595_vm3, %v1875_v19, %v393_v6  ;;  %v743_v19 = vsel %vm740_vm8, %v1458_v45, %v1459_v18 }
  0xb7   : > { %v423_v17 = vsel %vm421_vm10, %v1483_v4, %v1484_v62  ;;  %v772_v52 = vsel %vm595_vm3, %v1986_v35, %v695_v63  ;;  %v780_v45 = vsel %vm595_vm3, %v743_v19, %v1817_v0  ;;  %v883_v35 = vld [vmem:[%s2254_s4] sm:$0xf] }
  0xb8   : > { %v1492_v43 = vpop.permute.xlu0 %1491  ;;  %v600_v51 = vsel %vm595_vm3, %v408_v59, %v423_v17  ;;  %v422_v30 = vsel %vm421_vm10, %v1498_v15, %v1483_v4  ;;  %v424_v32 = vsel %vm421_vm10, %v1484_v62, %v1499_v12  ;;  %v1645_v60 = vpack.i.bf16 %v776_v3, %v772_v52 }
  0xb9   : > { %v2055_v57 = vpop.permute.xlu1 %1506  ;;  %v1494_v27 = vunpack.i.h.bf16 %v1492_v43  ;;  %v1493_v14 = vunpack.i.l.bf16 %v1492_v43  ;;  %v1270_v5 = vpack.c.bf16 %v600_v51, %v597_v25  ;;  %v1737_v12 = vmov 0  }
  0xba   : > { %1631 = vrot.lane.b32.xlu0 %v1630_v39, %s1730_s28  ;;  %1651 = vrot.lane.b32.xlu1 %v1650_v29, %s1730_s28  ;;  %v1509_v34 = vunpack.i.h.bf16 %v2055_v57  ;;  %v1508_v9 = vunpack.i.l.bf16 %v2055_v57  ;;  %v1660_v0 = vpack.i.bf16 %v1468_v61, %v780_v45 }
  0xbb   : > { %v407_v28 = vsel %vm406_vm9, %v1493_v14, %v1478_v22  ;;  %v409_v8 = vsel %vm406_vm9, %v1479_v20, %v1494_v27  ;;  %1271 = vmatprep.subr.bf16.mxu0 %v1270_v5  ;;  %1665 = vset.pattern.permute.xlu1 %v1737_v12 }
  0xbc   : > { %v1502_v39 = vpop.permute.xlu0 %1501  ;;  %v599_v16 = vsel %vm595_vm3, %v407_v28, %v422_v30  ;;  %v601_v38 = vsel %vm595_vm3, %v409_v8, %v424_v32  ;;  %v453_v53 = vsel %vm451_vm11, %v1508_v9, %v1509_v34  ;;  %1666 = vset.pattern.permute.xlu0 %v1737_v12 }
  0xbd   : > { %v2073_v41 = vpop.permute.xlu1 %1516  ;;  %v1504_v42 = vunpack.i.h.bf16 %v1502_v39  ;;  %v1503_v46 = vunpack.i.l.bf16 %v1502_v39  ;;  %v1272_v20 = vpack.c.bf16 %v599_v16, %v596_v33  ;;  %v1301_v24 = vpack.c.bf16 %v601_v38, %v598_v2 }
  0xbe   : > { %v1519_v22 = vunpack.i.h.bf16 %v2073_v41  ;;  %v1518_v37 = vunpack.i.l.bf16 %v2073_v41  ;;  %1641 = vrot.lane.b32.xlu0 %v1640_v1, %s1730_s28  ;;  %1656 = vrot.lane.b32.xlu1 %v1655_v13, %s1730_s28 }
  0xbf   : > { %v438_v54 = vsel %vm436_vm12, %v1503_v46, %v1504_v42  ;;  %1273 = vmatpush1.bf16.msra.mxu0 %v1272_v20  ;;  %1302 = vmatpush3.bf16.msra.mxu1 %v1301_v24 }
  0xc0   : > { %v1512_v59 = vpop.permute.xlu0 %1511  ;;  %v483_v48 = vsel %vm481_vm13, %v1518_v37, %v1519_v22  ;;  %1303 = vmatprep.subr.bf16.mxu1 %v1733_v31  ;;  %v603_v4 = vsel %vm595_vm3, %v438_v54, %v453_v53 }
  0xc1   : > { %v1527_v36 = vpop.permute.xlu1 %1526  ;;  %v1514_v55 = vunpack.i.h.bf16 %v1512_v59  ;;  %v1513_v44 = vunpack.i.l.bf16 %v1512_v59 }
  0xc2   : > { %1646 = vrot.lane.b32.xlu0 %v1645_v60, %s1730_s28  ;;  %v1529_v58 = vunpack.i.h.bf16 %v1527_v36  ;;  %v1528_v62 = vunpack.i.l.bf16 %v1527_v36  ;;  %886 = vperm.xlu1 %1665, %v883_v35  }
  0xc3   : > { %v468_v57 = vsel %vm466_vm15, %v1513_v44, %v1514_v55 }
  0xc4   : > { %v1522_v15 = vpop.permute.xlu0 %1521  ;;  %v606_v1 = vsel %vm595_vm3, %v468_v57, %v483_v48  ;;  %v452_v43 = vsel %vm451_vm11, %v1528_v62, %v1508_v9  ;;  %v454_v29 = vsel %vm451_vm11, %v1509_v34, %v1529_v58 }
  0xc5   : > { %v1537_v23 = vpop.permute.xlu1 %1536  ;;  %v1524_v3 = vunpack.i.h.bf16 %v1522_v15  ;;  %v1523_v49 = vunpack.i.l.bf16 %v1522_v15  ;;  %v1274_v26 = vpack.c.bf16 %v606_v1, %v603_v4 }
  0xc6   : > { %v1539_v17 = vunpack.i.h.bf16 %v1537_v23  ;;  %v1538_v25 = vunpack.i.l.bf16 %v1537_v23  ;;  %1661 = vrot.lane.b32.xlu0 %v1660_v0, %s1730_s28 }
  0xc7   : > { %v437_v40 = vsel %vm436_vm12, %v1523_v49, %v1503_v46  ;;  %v439_v21 = vsel %vm436_vm12, %v1504_v42, %v1524_v3  ;;  %1275 = vmatprep.subr.bf16.mxu0 %v1274_v26 }
  0xc8   : > { %v1532_v61 = vpop.permute.xlu0 %1531  ;;  %v482_v51 = vsel %vm481_vm13, %v1538_v25, %v1518_v37  ;;  %v484_v6 = vsel %vm481_vm13, %v1519_v22, %v1539_v17  ;;  %v602_v30 = vsel %vm595_vm3, %v437_v40, %v452_v43  ;;  %v604_v32 = vsel %vm595_vm3, %v439_v21, %v454_v29 }
  0xc9   : > { %v1547_v63 = vpop.permute.xlu1 %1546  ;;  %v1534_v27 = vunpack.i.h.bf16 %v1532_v61  ;;  %v1533_v14 = vunpack.i.l.bf16 %v1532_v61 }
  0xca   : > { %v1548_v36 = vunpack.i.l.bf16 %v1547_v63  ;;  %v1549_v19 = vunpack.i.h.bf16 %v1547_v63 }
  0xcb   : > { %v467_v18 = vsel %vm466_vm15, %v1533_v14, %v1513_v44  ;;  %v469_v13 = vsel %vm466_vm15, %v1514_v55, %v1534_v27 }
  0xcc   : > { %v1542_v5 = vpop.permute.xlu0 %1541  ;;  %v605_v33 = vsel %vm595_vm3, %v467_v18, %v482_v51  ;;  %v607_v34 = vsel %vm595_vm3, %v469_v13, %v484_v6  ;;  %v520_v24 = vsel %vm390_vm2, %v1548_v36, %v1935_v50  ;;  %v521_v55 = vsel %vm390_vm2, %v1935_v50, %v1549_v19 }
  0xcd   : > { %v1557_v41 = vpop.permute.xlu1 %1556  ;;  %v1544_v8 = vunpack.i.h.bf16 %v1542_v5  ;;  %v1543_v2 = vunpack.i.l.bf16 %v1542_v5  ;;  %v1276_v9 = vpack.c.bf16 %v605_v33, %v602_v30  ;;  %v1304_v39 = vpack.c.bf16 %v607_v34, %v604_v32 }
  0xce   : > { %v1559_v38 = vunpack.i.h.bf16 %v1557_v41  ;;  %v1558_v42 = vunpack.i.l.bf16 %v1557_v41 }
  0xcf   : > { %v498_v16 = vsel %vm496_vm0, %v1543_v2, %v1544_v8  ;;  %1277 = vmatpush1.bf16.msra.mxu0 %v1276_v9  ;;  %1305 = vmatpush3.bf16.msra.mxu1 %v1304_v39 }
  0xd0   : > { %v1552_v46 = vpop.permute.xlu0 %1551  ;;  %1306 = vmatprep.subr.bf16.mxu1 %v1733_v31  ;;  %v609_v20 = vsel %vm595_vm3, %v498_v16, %v1837_v7  ;;  %v499_v53 = vsel %vm496_vm0, %v1544_v8, %v1559_v38  ;;  %v497_v54 = vsel %vm496_vm0, %v1558_v42, %v1543_v2  ;;  %v519_v7 = vsel %vm390_vm2, %v1937_v56, %v1548_v36  ;;  %vm2204_vm2 = vmpackc.low %vm595_vm3, %vm1738_vm1 }
  0xd1   : > { %v2136_v28 = vpop.permute.xlu1 %1566  ;;  %v1554_v22 = vunpack.i.h.bf16 %v1552_v46  ;;  %v1553_v37 = vunpack.i.l.bf16 %v1552_v46  ;;  %v608_v44 = vsel %vm595_vm3, %v497_v54, %v1846_v10  ;;  %v610_v35 = vsel %vm595_vm3, %v499_v53, %v1850_v11 }
  0xd2   : > { %v1569_v62 = vunpack.i.h.bf16 %v2136_v28  ;;  %v1568_v4 = vunpack.i.l.bf16 %v2136_v28 }
  0xd3   : > { %v534_v52 = vsel %vm406_vm9, %v1553_v37, %v1554_v22 }
  0xd4   : > { %v1562_v59 = vpop.permute.xlu0 %1561  ;;  %v612_v60 = vsel %vm595_vm3, %v520_v24, %v534_v52  ;;  %v548_v17 = vsel %vm421_vm10, %v1568_v4, %v1569_v62 }
  0xd5   : > { %v2140_v47 = vpop.permute.xlu1 %1576  ;;  %v1564_v23 = vunpack.i.h.bf16 %v1562_v59  ;;  %v1563_v45 = vunpack.i.l.bf16 %v1562_v59  ;;  %v1278_v48 = vpack.c.bf16 %v612_v60, %v609_v20 }
  0xd6   : > { %v1579_v10 = vunpack.i.h.bf16 %v2140_v47  ;;  %v1578_v15 = vunpack.i.l.bf16 %v2140_v47 }
  0xd7   : > { %v533_v57 = vsel %vm406_vm9, %v1563_v45, %v1553_v37  ;;  %v535_v58 = vsel %vm406_vm9, %v1554_v22, %v1564_v23  ;;  %1279 = vmatprep.subr.bf16.mxu0 %v1278_v48 }
  0xd8   : > { %v611_v50 = vsel %vm595_vm3, %v519_v7, %v533_v57  ;;  %v613_v56 = vsel %vm595_vm3, %v521_v55, %v535_v58  ;;  %v1572_v0 = vpop.permute.xlu0 %1571  ;;  %v576_v29 = vsel %vm451_vm11, %v1578_v15, %v1579_v10 }
  0xd9   : > { %v1587_v12 = vpop.permute.xlu1 %1586  ;;  %v1280_v11 = vpack.c.bf16 %v611_v50, %v608_v44  ;;  %v1307_v63 = vpack.c.bf16 %v613_v56, %v610_v35  ;;  %v1574_v1 = vunpack.i.h.bf16 %v1572_v0  ;;  %v1573_v3 = vunpack.i.l.bf16 %v1572_v0 }
  0xda   : > { %v1589_v41 = vunpack.i.h.bf16 %v1587_v12  ;;  %v1588_v51 = vunpack.i.l.bf16 %v1587_v12 }
  0xdb   : > { %1281 = vmatpush1.bf16.msra.mxu0 %v1280_v11  ;;  %1308 = vmatpush3.bf16.msra.mxu1 %v1307_v63  ;;  %v562_v49 = vsel %vm436_vm12, %v1573_v3, %v1574_v1 }
  0xdc   : > { %v1582_v25 = vpop.permute.xlu0 %1581  ;;  %1309 = vmatprep.subr.bf16.mxu1 %v1733_v31  ;;  %v615_v21 = vsel %vm595_vm3, %v548_v17, %v562_v49  ;;  %v547_v34 = vsel %vm421_vm10, %v1588_v51, %v1568_v4  ;;  %v549_v28 = vsel %vm421_vm10, %v1569_v62, %v1589_v41 }
  0xdd   : > { %v1584_v26 = vunpack.i.h.bf16 %v1582_v25  ;;  %v1583_v43 = vunpack.i.l.bf16 %v1582_v25  ;;  %v1597_v40 = vpop.permute.xlu1 %1596 }
  0xde   : > { %v1599_v27 = vunpack.i.h.bf16 %v1597_v40  ;;  %v1598_v18 = vunpack.i.l.bf16 %v1597_v40 }
  0xdf   : > { %v590_v61 = vsel %vm466_vm15, %v1583_v43, %v1584_v26 }
  0xe0   : > { %v1592_v6 = vpop.permute.xlu0 %1591  ;;  %v618_v14 = vsel %vm595_vm3, %v576_v29, %v590_v61  ;;  %v575_v39 = vsel %vm451_vm11, %v1598_v18, %v1578_v15  ;;  %v577_v36 = vsel %vm451_vm11, %v1579_v10, %v1599_v27 }
  0xe1   : > { %v1594_v30 = vunpack.i.h.bf16 %v1592_v6  ;;  %v1593_v32 = vunpack.i.l.bf16 %v1592_v6  ;;  %v1282_v13 = vpack.c.bf16 %v618_v14, %v615_v21 }
  0xe3   : > { %v561_v5 = vsel %vm436_vm12, %v1593_v32, %v1573_v3  ;;  %v563_v33 = vsel %vm436_vm12, %v1574_v1, %v1594_v30  ;;  %1283 = vmatprep.subr.bf16.mxu0 %v1282_v13 }
  0xe4   : > { %v1602_v8 = vpop.permute.xlu0 %1601  ;;  %v614_v16 = vsel %vm595_vm3, %v547_v34, %v561_v5  ;;  %v616_v38 = vsel %vm595_vm3, %v549_v28, %v563_v33 }
  0xe5   : > { %v1604_v2 = vunpack.i.h.bf16 %v1602_v8  ;;  %v1603_v9 = vunpack.i.l.bf16 %v1602_v8 }
  0xe7   : > { %v589_v42 = vsel %vm466_vm15, %v1603_v9, %v1583_v43  ;;  %v591_v46 = vsel %vm466_vm15, %v1584_v26, %v1604_v2 }
  0xe8   : > { %v617_v22 = vsel %vm595_vm3, %v575_v39, %v589_v42  ;;  %v619_v37 = vsel %vm595_vm3, %v577_v36, %v591_v46 }
  0xe9   : > { %v1284_v47 = vpack.c.bf16 %v617_v22, %v614_v16  ;;  %v1310_v19 = vpack.c.bf16 %v619_v37, %v616_v38 }
  0xeb   : > { %1285 = vmatpush1.bf16.msra.mxu0 %v1284_v47  ;;  %1311 = vmatpush3.bf16.msra.mxu1 %v1310_v19 }
  0xec   : > { %1312 = vmatprep.subr.bf16.mxu1 %v1733_v31 }
 0x11c   : > { %v1607_v20 = vpop.permute.xlu1 %1606 }
 0x11d   : > { %v1609_v49 = vunpack.i.h.bf16 %v1607_v20  ;;  %v1608_v17 = vunpack.i.l.bf16 %v1607_v20  ;;  %v882_v20 = vld [vmem:[%s2253_s3] sm:$0xf] }
 0x120   : > { %v1617_v24 = vpop.permute.xlu1 %1616 }
 0x121   : > { %v1619_v54 = vunpack.i.h.bf16 %v1617_v24  ;;  %v1618_v59 = vunpack.i.l.bf16 %v1617_v24 }
 0x123   : > { %v850_v44 = vsel %vm481_vm13, %v1618_v59, %v1619_v54 }
 0x124   : > { %v2186_v52 = vpop.permute.xlu0 %1611  ;;  %v1627_v53 = vpop.permute.xlu1 %1626 }
 0x125   : > { %v1628_v60 = vunpack.i.l.bf16 %v1627_v53  ;;  %v1629_v48 = vunpack.i.h.bf16 %v1627_v53  ;;  %v1614_v29 = vunpack.i.h.bf16 %v2186_v52  ;;  %v1613_v40 = vunpack.i.l.bf16 %v2186_v52 }
 0x126   : > { %v1044_v52 = vlaneseq }
 0x127   : > { %v849_v57 = vsel %vm481_vm13, %v1628_v60, %v1618_v59  ;;  %v865_v33 = vsel %vm481_vm13, %v1613_v40, %v1614_v29  ;;  %v1042_v59 = vld [vmem:[%s2255_s5] sm:$0x7] }
 0x128   : > { %v1622_v23 = vpop.permute.xlu0 %1621  ;;  %v1637_v45 = vpop.permute.xlu1 %1636  ;;  %v1045_v53 = vshrl.u32 %v1044_v52, 7 }
 0x129   : > { %v1624_v55 = vunpack.i.h.bf16 %v1622_v23  ;;  %v1623_v7 = vunpack.i.l.bf16 %v1622_v23  ;;  %v1639_v10 = vunpack.i.h.bf16 %v1637_v45  ;;  %v1638_v15 = vunpack.i.l.bf16 %v1637_v45 }
 0x12a   : > { %v1050_v60 = vsub.s32 1, %v1045_v53  ;;  %v1054_v45 = vsub.s32 2, %v1045_v53 }
 0x12b   : > { %v853_v35 = vsel %vm481_vm13, %v1623_v7, %v1624_v55  ;;  %v852_v58 = vsel %vm481_vm13, %v1629_v48, %v1623_v7  ;;  %v856_v6 = vsel %vm481_vm13, %v1638_v15, %v1639_v10  ;;  %v855_v30 = vsel %vm481_vm13, %v1608_v17, %v1638_v15 }
 0x12c   : > { %v1632_v62 = vpop.permute.xlu0 %1631  ;;  %v1652_v4 = vpop.permute.xlu1 %1651  ;;  %v1286_v12 = vpack.c.bf16 %v853_v35, %v850_v44  ;;  %v1288_v50 = vpack.c.bf16 %v852_v58, %v849_v57  ;;  %v1051_v35 = vrot.slane %v1042_v59, %v1050_v60 }
 0x12d   : > { %v1634_v56 = vunpack.i.h.bf16 %v1632_v62  ;;  %v1633_v0 = vunpack.i.l.bf16 %v1632_v62  ;;  %v1654_v11 = vunpack.i.h.bf16 %v1652_v4  ;;  %v1653_v63 = vunpack.i.l.bf16 %v1652_v4 }
 0x12e   : > { %1287 = vmatprep.subr.bf16.mxu0 %v1286_v12  ;;  %v1055_v12 = vrot.slane %v1042_v59, %v1054_v45 }
 0x12f   : > { %1289 = vmatpush1.bf16.msra.mxu0 %v1288_v50  ;;  %v851_v1 = vsel %vm481_vm13, %v1619_v54, %v1633_v0  ;;  %v854_v3 = vsel %vm481_vm13, %v1624_v55, %v1634_v56  ;;  %v862_v27 = vsel %vm481_vm13, %v1653_v63, %v1654_v11  ;;  %v1046_v54 = vsub.s32 0, %v1045_v53 }
 0x130   : > { %v1642_v25 = vpop.permute.xlu0 %1641  ;;  %v1657_v26 = vpop.permute.xlu1 %1656  ;;  %v1313_v43 = vpack.c.bf16 %v854_v3, %v851_v1  ;;  %v1294_v2 = vpack.c.bf16 %v865_v33, %v862_v27 }
 0x131   : > { %v1644_v21 = vunpack.i.h.bf16 %v1642_v25  ;;  %v1643_v61 = vunpack.i.l.bf16 %v1642_v25  ;;  %v1659_v41 = vunpack.i.h.bf16 %v1657_v26  ;;  %v1658_v51 = vunpack.i.l.bf16 %v1657_v26 }
 0x132   : > { %1314 = vmatpush3.bf16.msra.mxu1 %v1313_v43  ;;  %v1047_v55 = vrot.slane %v1042_v59, %v1046_v54 }
 0x133   : > { %v859_v14 = vsel %vm481_vm13, %v1643_v61, %v1644_v21  ;;  %v858_v32 = vsel %vm481_vm13, %v1609_v49, %v1643_v61  ;;  %1315 = vmatprep.subr.bf16.mxu1 %v1733_v31  ;;  %v864_v9 = vsel %vm481_vm13, %v1659_v41, %v1613_v40  ;;  %v861_v39 = vsel %vm481_vm13, %v1658_v51, %v1653_v63 }
 0x134   : > { %v1647_v18 = vpop.permute.xlu0 %1646  ;;  %v1290_v13 = vpack.c.bf16 %v859_v14, %v856_v6  ;;  %v1292_v5 = vpack.c.bf16 %v858_v32, %v855_v30  ;;  %v1297_v46 = vpack.c.bf16 %v864_v9, %v861_v39 }
 0x135   : > { %v1649_v34 = vunpack.i.h.bf16 %v1647_v18  ;;  %v1648_v28 = vunpack.i.l.bf16 %v1647_v18 }
 0x136   : > { %1291 = vmatprep.subr.bf16.mxu0 %v1290_v13 }
 0x137   : > { %1293 = vmatpush1.bf16.msra.mxu0 %v1292_v5  ;;  %v857_v36 = vsel %vm481_vm13, %v1639_v10, %v1648_v28  ;;  %v860_v16 = vsel %vm481_vm13, %v1644_v21, %v1649_v34 }
 0x138   : > { %v1662_v38 = vpop.permute.xlu0 %1661  ;;  %1296 = vmatprep.subr.msk.bf16.mxu0 %vm2204_vm2, %v1294_v2  ;;  %v1316_v42 = vpack.c.bf16 %v860_v16, %v857_v36 }
 0x139   : > { %v1664_v22 = vunpack.i.h.bf16 %v1662_v38  ;;  %v1663_v37 = vunpack.i.l.bf16 %v1662_v38 }
 0x13a   : > { %1317 = vmatpush3.bf16.msra.mxu1 %v1316_v42 }
 0x13b   : > { %v863_v47 = vsel %vm481_vm13, %v1654_v11, %v1663_v37  ;;  %v866_v19 = vsel %vm481_vm13, %v1614_v29, %v1664_v22  ;;  %1299 = vmatpush1.bf16.msk.msra.mxu0 %vm2204_vm2, %v1297_v46  ;;  %1318 = vmatprep.subr.bf16.mxu1 %v1733_v31 }
 0x13c   : > { %v1319_v24 = vpack.c.bf16 %v866_v19, %v863_v47 }
 0x13e   : > { %1219 = vmatmul.mubr.msk.f32.vlgmr.msra.gmra.mrb[0].mxu0 %vm451_vm11, %v882_v20  ;;  %1321 = vmatpush3.bf16.msk.msra.mxu1 %vm2204_vm2, %v1319_v24 }
 0x141   : > { %1268 = vmatmul.mubr.msk.f32.vlgmr.msra.gmra.mrb[0].mxu1 %vm451_vm11, %v882_v20  ;;  %v887_v31 = vpop.permute.xlu1 %886 }
 0x211   : > { %v964_v23 = vpop.f32.mrb[0].mxu0 }
 0x212   : > { %v965_v48 = vadd.f32 %v964_v23, %v887_v31  ;;  %v966_v7 = vpop.f32.mrb[1].mxu0 }
 0x213   : > { %v967_v44 = vadd.f32 %v966_v7, %v887_v31 }
 0x214   : > { %v1039_v57 = vmax.f32 %v965_v48, 0.0  ;;  %v1035_v58 = vpop.f32.mrb[0].mxu1 }
 0x215   : > { %v1040_v62 = vmax.f32 %v967_v44, 0.0  ;;  %v1036_v4 = vadd.f32 %v1035_v58, %v887_v31  ;;  %v1269_v50 = vpop.f32.mrb[1].mxu1 }
 0x216   : > { %v1059_v56 = vmul.f32 %v1047_v55, %v1039_v57 }
 0x217   : > { %v1060_v0 = vmul.f32 %v1051_v35, %v1040_v62  ;;  %v1041_v10 = vmax.f32 %v1036_v4, 0.0 }
 0x219   : > { %v1064_v15 = vcombine.low %v1059_v56, %v1060_v0  ;;  %v1061_v11 = vmul.f32 %v1055_v12, %v1041_v10 }
 0x21b   : > { %1066 = vst [vmem:[%s369_s29] sm:$0xff] %v1064_v15  ;;  %1067 = vst [vmem:[%s369_s29 + $0x8] sm:$0xf] %v1061_v11 }
 0x21c PF: > { %s16_s25 = sadd.s32 1, %s1717_s25   ;;  %s2259_s21 = smov %s1709_s23 }
 0x21d   : > { %p13_p10 = scmp.ge.s32.totalorder %s16_s25, 34   ;;  %s2260_s22 = smov %s1713_s24 }
 0x21e   : > { %s2261_s23 = smov %s2264_s26  ;;  %s2262_s24 = smov %s2268_s27 }
 0x21f   :  { %15 = sbr.rel (!%p13_p10) target bundleno = 3 (0x3), region = 80 }

// kernel: residual_conv_block.3
= control target key start
LH: loop header
LB: loop body
LE: loop exit
PB: predicated region body
PF: predicated region fallthrough
CT: control target
= control target key end

     0   :  { %s1871_s24 = smov 0   ;;  %s1873_s25 = smov 0   ;;  %s2357_s0 = inlined_call_operand.vmem [shape: f32[2,18,4,512], index: 0, kind: input, shape index: {}, may-alias: {0,1,2}]   ;;  %s2358_s1 = inlined_call_operand.vmem [shape: f32[2,18,4,512], index: 1, kind: input, shape index: {}, may-alias: {0,1,2}]   ;;  %s2359_s2 = inlined_call_operand.vmem [shape: f32[2,18,4,512], index: 2, kind: input, shape index: {}, may-alias: {0,1,2}]   ;;  %s2360_s3 = inlined_call_operand.vmem [shape: f32[4,108], index: 3, kind: input, shape index: {}]   ;;  %s2361_s4 = inlined_call_operand.vmem [shape: f32[4,1], index: 4, kind: input, shape index: {}]   ;;  %s2362_s5 = inlined_call_operand.vmem [shape: f32[1,384], index: 5, kind: input, shape index: {}]   ;;  %s2363_s6 = inlined_call_operand.vmem [shape: f32[2,16,4,384], index: 6, kind: input, shape index: {}]   ;;  %s2364_s7 = inlined_call_operand.vmem [shape: f32[2,16,4,384], index: 7, kind: output, shape index: {}]  }
   0x1   :  { %s1875_s26 = smov 0   ;;  %s1877_s27 = smov 0  }
   0x2   :  { %s1879_s28 = smov 0  }
   0x3 LB: > { %s26_s29 = sadd.s32 1, %s1801_s26  ;;  %s29_s30 = sadd.s32 1, %s1805_s27  ;;  %s1809_s28 = sphi %s1879_s28, %s17_s28   ;;  %s1805_s27 = sphi %s1877_s27, %s2370_s27   ;;  %s1801_s26 = sphi %s1875_s26, %s2369_s26   ;;  %s1797_s25 = sphi %s1873_s25, %s2368_s25   ;;  %s1793_s24 = sphi %s1871_s24, %s2367_s24  }
   0x4   : > { %p27_p0 = scmp.ge.s32.totalorder %s26_s29, 16  ;;  %p1299_p1 = scmp.ge.s32.totalorder %s1809_s28, 1 }
   0x5   : > { %p313_p2 = scmp.lt.s32.totalorder %s1809_s28, 33 }
   0x6   : > { %s2372_s29 = smov (%p27_p0, %s26_s29), 0  ;;  %s2374_s30 = smov (!%p27_p0, %s29_s30), %s1805_s27 }
   0x7   : > { %p314_p3 = pnand %p1299_p1, %p313_p2  ;;  %p31_p4 = scmp.ge.s32.totalorder %s2374_s30, 2 }
   0x8   : > { %p382_p5 = scmp.lt.s32.totalorder (!%p314_p3), %s1797_s25, 1  ;;  %s402_s8 = sadd.s32 (!%p314_p3), 2, %s1793_s24  ;;  %v1825_v31 = vmov (!%p314_p3), 0.0|0.0   ;;  %vm703_vm0 = vcmask (!%p314_p3), 302080   ;;  %vm720_vm1 = vcmask (!%p314_p3), 293888   ;;  %vm451_vm2 = vcmask (!%p314_p3), 1039360  }
   0x9   : > { %s2376_s30 = smov (%p31_p4, %s2374_s30), 0  ;;  %317 = sbr.rel (%p314_p3) target bundleno = 542 (0x21e), region = 48 }
   0xa   : > { %p405_p6 = scmp.lt.s32.totalorder (!%p314_p3), %s402_s8, 17  ;;  %s391_s10 = sadd.s32 (!%p314_p3), 1, %s1793_s24  ;;  %1391 = vmatprep.subr.bf16.mxu1 (!%p314_p3), %v1825_v31  ;;  %vm656_vm3 = vcmask (!%p314_p3), 1043456   ;;  %vm737_vm4 = vcmask (!%p314_p3), 285696   ;;  %vm753_vm5 = vcmask (!%p314_p3), 154624   ;;  %vm769_vm6 = vcmask (!%p314_p3), 146432  }
   0xb   : > { %p394_p7 = scmp.lt.s32.totalorder (!%p314_p3), %s391_s10, 17  ;;  %s1811_s17 = smov (!%p314_p3), 37   ;;  %vm785_vm7 = vcmask (!%p314_p3), 138240   ;;  %vm801_vm8 = vcmask (!%p314_p3), 7168   ;;  %vm467_vm9 = vcmask (!%p314_p3), 1031168   ;;  %vm482_vm10 = vcmask (!%p314_p3), 900096  }
   0xc   : > { %p384_p8 = scmp.lt.s32.totalorder (!%p314_p3), %s1793_s24, 17  ;;  %s1815_s14 = smov (!%p314_p3), 19   ;;  %vm512_vm11 = vcmask (!%p314_p3), 883712   ;;  %vm497_vm12 = vcmask (!%p314_p3), 891904   ;;  %vm542_vm13 = vcmask (!%p314_p3), 744448   ;;  %vm1828_vm14 = vmmov (!%p314_p3), 0  }
   0xd   : > { %s1817_s21 = smov (!%p314_p3), 17   ;;  %s1818_s22 = smov (!%p314_p3), 1   ;;  %vm527_vm15 = vcmask (!%p314_p3), 752640  }
   0xe   : > { %p415_p9 = scmp.lt.s32.totalorder (!%p314_p3), %s1793_s24, 15 }
  0x10   : > { %s2378_s25 = smov (!%p382_p5, %s1797_s25), 1  ;;  %s2380_s8 = smov (!%p405_p6, %s402_s8), 17 }
  0x11   : > { %s1907_s9 = smul.u32 72, %s2378_s25  ;;  %s1304_s11 = sshll.u32 %s2380_s8, 2 }
  0x12   : > { %s2382_s10 = smov (!%p394_p7, %s391_s10), 17  ;;  %s1812_s8 = smov 127  }
  0x13   : > { %s409_s12 = sadd.s32 %s1907_s9, %s1304_s11  ;;  %s1302_s18 = sshll.u32 %s2382_s10, 2 }
  0x14   : > { %s1305_s13 = sshll.u32 %s409_s12, 2  ;;  %s398_s19 = sadd.s32 %s1907_s9, %s1302_s18 }
  0x15   : > { %s411_s16 = scalar_lea.vmem %s2359_s2, %s1305_s13  ;;  %s1303_s20 = sshll.u32 %s398_s19, 2 }
  0x16   : > { %v1914_v0 = vld [vmem:[%s411_s16 + $0x8] sm:$0xff]  ;;  %v1916_v1 = vld [vmem:[%s411_s16] sm:$0xff]  ;;  %s400_s23 = scalar_lea.vmem %s2358_s1, %s1303_s20  ;;  %s1813_s10 = smov 36  }
  0x17   : > { %701 = vrot.lane.b32.xlu1 %v1914_v0, %s1811_s17  ;;  %v696_v2 = vcombine.high %v1916_v1, %v1916_v1  ;;  %v1923_v3 = vcombine.low %v1914_v0, %v1914_v0  ;;  %v728_v6 = vcombine.high %v1914_v0, %v1914_v0  ;;  %v1934_v7 = vld [vmem:[%s400_s23] sm:$0xff]  ;;  %v1936_v8 = vld [vmem:[%s400_s23 + $0x8] sm:$0xff]  ;;  %v1954_v13 = vcombine.low %v1916_v1, %v1916_v1  ;;  %s385_s11 = scalar_select %p384_p8, %s1793_s24, 17 }
  0x18   : > { %v1476_v9 = vpack.i.bf16 %v1936_v8, %v1934_v7  ;;  %v1943_v10 = vcombine.low %v1934_v7, %v1934_v7  ;;  %v1947_v11 = vcombine.low %v1936_v8, %v1936_v8  ;;  %s1814_s12 = smov 35   ;;  %s1820_s23 = smov 110   ;;  %v1998_v28 = vcombine.high %v1934_v7, %v1934_v7 }
  0x19   : > { %v1486_v4 = vpack.i.bf16 %v696_v2, %v1916_v1  ;;  %v1496_v5 = vpack.i.bf16 %v1914_v0, %v1923_v3  ;;  %v1506_v14 = vpack.i.bf16 %v728_v6, %v1914_v0  ;;  %v1491_v15 = vpack.i.bf16 %v1916_v1, %v1954_v13  ;;  %s1300_s13 = sshll.u32 %s385_s11, 2  ;;  %s1822_s11 = smov 91  }
  0x1a   : > { %1477 = vrot.lane.b32.xlu0 %v1476_v9, %s1812_s8  ;;  %v1481_v12 = vpack.i.bf16 %v1943_v10, %v1947_v11  ;;  %s388_s15 = sadd.s32 %s1907_s9, %s1300_s13  ;;  %v1556_v17 = vpack.i.bf16 %v1916_v1, %v728_v6  ;;  %v1551_v22 = vpack.i.bf16 %v1914_v0, %v696_v2  ;;  %s1819_s9 = smov 126   ;;  %v571_v29 = vcombine.high %v1936_v8, %v1936_v8 }
  0x1b   : > { %1487 = vrot.lane.b32.xlu1 %v1486_v4, %s1811_s17  ;;  %s1301_s16 = sshll.u32 %s388_s15, 2  ;;  %s1816_s17 = smov 18   ;;  %v1656_v32 = vpack.i.bf16 %v1936_v8, %v1998_v28  ;;  %v1641_v33 = vpack.i.bf16 %v1947_v11, %v1934_v7  ;;  %v1651_v34 = vpack.i.bf16 %v1936_v8, %v1943_v10 }
  0x1c   : > { %s390_s20 = scalar_lea.vmem %s2357_s0, %s1301_s16  ;;  %s1824_s13 = smov 92   ;;  %v1636_v30 = vpack.i.bf16 %v571_v29, %v1998_v28  ;;  %v1676_v35 = vpack.i.bf16 %v571_v29, %v1934_v7 }
  0x1d   : > { %v1965_v16 = vld [vmem:[%s390_s20] sm:$0xff]  ;;  %v1972_v19 = vld [vmem:[%s390_s20 + $0x8] sm:$0xff]  ;;  %s2384_s24 = smov (!%p415_p9, %s1793_s24), 15  ;;  %s1415_s18 = smul.u32 48, %s2378_s25 }
  0x1e   : > { %1482 = vrot.lane.b32.xlu0 %v1481_v12, %s1812_s8  ;;  %v1970_v18 = vcombine.high %v1965_v16, %v1965_v16  ;;  %v441_v21 = vcombine.low %v1965_v16, %v1965_v16  ;;  %v442_v23 = vcombine.low %v1972_v19, %v1972_v19  ;;  %v458_v26 = vcombine.high %v1972_v19, %v1972_v19  ;;  %s1414_s19 = smul.u32 3, %s2384_s24 }
  0x1f   : > { %1497 = vrot.lane.b32.xlu1 %v1496_v5, %s1813_s10 }
  0x20   : > { %v1566_v20 = vpack.i.bf16 %v1972_v19, %v1970_v18  ;;  %v1576_v24 = vpack.i.bf16 %v1972_v19, %v441_v21  ;;  %v1561_v25 = vpack.i.bf16 %v442_v23, %v1965_v16  ;;  %v1581_v27 = vpack.i.bf16 %v458_v26, %v1965_v16  ;;  %s2326_s20 = sadd.s32 %s1415_s18, %s1414_s19 }
  0x22   : > { %1492 = vrot.lane.b32.xlu0 %v1491_v15, %s1813_s10  ;;  %s1821_s10 = smov 108  }
  0x23   : > { %1507 = vrot.lane.b32.xlu1 %v1506_v14, %s1814_s12 }
  0x26   : > { %1502 = vrot.lane.b32.xlu0 %v1486_v4, %s1814_s12  ;;  %s1823_s12 = smov 109  }
  0x27   : > { %1517 = vrot.lane.b32.xlu1 %v1496_v5, %s1815_s14 }
  0x2a   : > { %1512 = vrot.lane.b32.xlu0 %v1491_v15, %s1815_s14  ;;  %s1826_s14 = smov 90  }
  0x2b   : > { %1527 = vrot.lane.b32.xlu1 %v1506_v14, %s1816_s17 }
  0x2e   : > { %1522 = vrot.lane.b32.xlu0 %v1486_v4, %s1816_s17 }
  0x2f   : > { %1537 = vrot.lane.b32.xlu1 %v1496_v5, %s1817_s21 }
  0x32   : > { %1532 = vrot.lane.b32.xlu0 %v1491_v15, %s1817_s21  ;;  %s1306_s21 = sshll.u32 %s2326_s20, 2 }
  0x33   : > { %1547 = vrot.lane.b32.xlu1 %v1506_v14, %s1818_s22 }
  0x36   : > { %1542 = vrot.lane.b32.xlu0 %v1486_v4, %s1818_s22 }
  0x37   : > { %1557 = vrot.lane.b32.xlu1 %v1556_v17, %s1812_s8 }
  0x3a   : > { %1552 = vrot.lane.b32.xlu0 %v1551_v22, %s1812_s8 }
  0x3b   : > { %1567 = vrot.lane.b32.xlu1 %v1566_v20, %s1819_s9 }
  0x3e   : > { %1562 = vrot.lane.b32.xlu0 %v1561_v25, %s1812_s8 }
  0x3f   : > { %1577 = vrot.lane.b32.xlu1 %v1576_v24, %s1812_s8 }
  0x42   : > { %1572 = vrot.lane.b32.xlu0 %v1561_v25, %s1820_s23 }
  0x43   : > { %1587 = vrot.lane.b32.xlu1 %v1576_v24, %s1820_s23 }
  0x46   : > { %1582 = vrot.lane.b32.xlu0 %v1581_v27, %s1819_s9 }
  0x47   : > { %1597 = vrot.lane.b32.xlu1 %v1561_v25, %s1821_s10 }
  0x4a   : > { %1592 = vrot.lane.b32.xlu0 %v1566_v20, %s1823_s12 }
  0x4b   : > { %1607 = vrot.lane.b32.xlu1 %v1561_v25, %s1822_s11 }
  0x4e   : > { %1602 = vrot.lane.b32.xlu0 %v1566_v20, %s1824_s13 }
  0x4f   : > { %1617 = vrot.lane.b32.xlu1 %v1576_v24, %s1821_s10 }
  0x52   : > { %1612 = vrot.lane.b32.xlu0 %v1581_v27, %s1823_s12 }
  0x53   : > { %1627 = vrot.lane.b32.xlu1 %v1576_v24, %s1822_s11 }
  0x56   : > { %1622 = vrot.lane.b32.xlu0 %v1581_v27, %s1824_s13 }
  0x57   : > { %1637 = vrot.lane.b32.xlu1 %v1636_v30, %s1812_s8 }
  0x5a   : > { %1632 = vrot.lane.b32.xlu0 %v1566_v20, %s1826_s14 }
  0x5b   : > { %1647 = vrot.lane.b32.xlu1 %v1581_v27, %s1826_s14 }
  0x5e   : > { %1642 = vrot.lane.b32.xlu0 %v1641_v33, %s1819_s9 }
  0x5f   : > { %1657 = vrot.lane.b32.xlu1 %v1656_v32, %s1820_s23 }
  0x62   : > { %1652 = vrot.lane.b32.xlu0 %v1651_v34, %s1819_s9 }
  0x63   : > { %1667 = vrot.lane.b32.xlu1 %v1656_v32, %s1821_s10 }
  0x66   : > { %1662 = vrot.lane.b32.xlu0 %v1641_v33, %s1823_s12 }
  0x67   : > { %1677 = vrot.lane.b32.xlu1 %v1676_v35, %s1820_s23  ;;  %s421_s23 = scalar_lea.vmem %s2363_s6, %s1306_s21 }
  0x6a   : > { %1672 = vrot.lane.b32.xlu0 %v1641_v33, %s1824_s13 }
  0x6b   : > { %1687 = vrot.lane.b32.xlu1 %v1676_v35, %s1821_s10 }
  0x6e   : > { %1682 = vrot.lane.b32.xlu0 %v1651_v34, %s1823_s12  ;;  %s430_s12 = scalar_lea.vmem %s2364_s7, %s1306_s21 }
  0x72   : > { %1692 = vrot.lane.b32.xlu0 %v1651_v34, %s1824_s13 }
  0x89   : > { %v702_v36 = vpop.permute.xlu1 %701 }
  0x8c   : > { %v1478_v38 = vpop.permute.xlu0 %1477 }
  0x8d   : > { %v1488_v37 = vpop.permute.xlu1 %1487  ;;  %v2032_v50 = vunpack.i.h.bf16 %v1478_v38  ;;  %v2034_v56 = vunpack.i.l.bf16 %v1478_v38 }
  0x8e   : > { %v1490_v51 = vunpack.i.h.bf16 %v1488_v37  ;;  %v1489_v52 = vunpack.i.l.bf16 %v1488_v37 }
  0x8f   : > { %v2047_v2 = vsel %vm656_vm3, %v571_v29, %v2032_v50 }
  0x90   : > { %v1483_v40 = vpop.permute.xlu0 %1482  ;;  %v705_v61 = vsel %vm703_vm0, %v1490_v51, %v702_v36  ;;  %v704_v62 = vsel %vm703_vm0, %v1489_v52, %v1490_v51  ;;  %vm557_vm0 = vcmask 736256  }
  0x91   : > { %v1498_v39 = vpop.permute.xlu1 %1497  ;;  %v1484_v53 = vunpack.i.l.bf16 %v1483_v40  ;;  %v1485_v57 = vunpack.i.h.bf16 %v1483_v40 }
  0x92   : > { %v1500_v46 = vunpack.i.h.bf16 %v1498_v39  ;;  %v1499_v47 = vunpack.i.l.bf16 %v1498_v39 }
  0x93   : > { %v688_v63 = vsel %vm451_vm2, %v2034_v56, %v1484_v53  ;;  %v689_v4 = vsel %vm451_vm2, %v1484_v53, %v2032_v50  ;;  %v687_v12 = vsel %vm451_vm2, %v1485_v57, %v2034_v56 }
  0x94   : > { %v1493_v42 = vpop.permute.xlu0 %1492  ;;  %v723_v58 = vsel %vm720_vm1, %v1499_v47, %v1500_v46  ;;  %v823_v25 = vsel %vm656_vm3, %v1998_v28, %v688_v63  ;;  %v824_v27 = vsel %vm656_vm3, %v1936_v8, %v689_v4  ;;  %v822_v38 = vsel %vm656_vm3, %v1934_v7, %v687_v12 }
  0x95   : > { %v2020_v41 = vpop.permute.xlu1 %1507  ;;  %v1495_v54 = vunpack.i.h.bf16 %v1493_v42  ;;  %v1494_v55 = vunpack.i.l.bf16 %v1493_v42  ;;  %v2054_v9 = vsel %vm656_vm3, %v702_v36, %v723_v58  ;;  %v1706_v42 = vpack.i.bf16 %v824_v27, %v823_v25 }
  0x96   : > { %v1510_v15 = vunpack.i.h.bf16 %v2020_v41  ;;  %v1509_v17 = vunpack.i.l.bf16 %v2020_v41  ;;  %v1721_v39 = vpack.i.bf16 %v2054_v9, %v2047_v2 }
  0x97   : > { %v721_v5 = vsel %vm720_vm1, %v1494_v55, %v1495_v54  ;;  %v722_v14 = vsel %vm720_vm1, %v1495_v54, %v1499_v47  ;;  %v826_v29 = vsel %vm656_vm3, %v1489_v52, %v1494_v55  ;;  %vm1830_vm1 = vmmov 1  }
  0x98   : > { %v2024_v44 = vpop.permute.xlu0 %1502  ;;  %v2072_v30 = vsel %vm656_vm3, %v704_v62, %v721_v5  ;;  %v2080_v28 = vsel %vm656_vm3, %v705_v61, %v722_v14  ;;  %v2083_v35 = vsel %vm737_vm4, %v1509_v17, %v1510_v15 }
  0x99   : > { %v2022_v43 = vpop.permute.xlu1 %1517  ;;  %v1504_v22 = vunpack.i.l.bf16 %v2024_v44  ;;  %v1505_v26 = vunpack.i.h.bf16 %v2024_v44  ;;  %v1716_v44 = vpack.i.bf16 %v826_v29, %v822_v38  ;;  %v1711_v51 = vpack.i.bf16 %v2080_v28, %v2072_v30 }
  0x9a   : > { %v1520_v40 = vunpack.i.h.bf16 %v2022_v43  ;;  %v1519_v41 = vunpack.i.l.bf16 %v2022_v43 }
  0x9b   : > { %v739_v46 = vsel %vm737_vm4, %v1505_v26, %v1509_v17  ;;  %v738_v52 = vsel %vm737_vm4, %v1504_v22, %v1505_v26 }
  0x9c   : > { %v2028_v48 = vpop.permute.xlu0 %1512 }
  0x9d   : > { %v2026_v45 = vpop.permute.xlu1 %1527  ;;  %v1514_v6 = vunpack.i.l.bf16 %v2028_v48  ;;  %v1515_v32 = vunpack.i.h.bf16 %v2028_v48 }
  0x9e   : > { %v1530_v47 = vunpack.i.h.bf16 %v2026_v45  ;;  %v1529_v48 = vunpack.i.l.bf16 %v2026_v45 }
  0x9f   : > { %v830_v33 = vsel %vm656_vm3, %v1504_v22, %v1514_v6  ;;  %v755_v53 = vsel %vm753_vm5, %v1515_v32, %v1519_v41  ;;  %v754_v54 = vsel %vm753_vm5, %v1514_v6, %v1515_v32 }
  0xa0   : > { %v2037_v59 = vpop.permute.xlu0 %1522  ;;  %v772_v6 = vsel %vm769_vm6, %v1529_v48, %v1530_v47  ;;  %v832_v17 = vsel %vm656_vm3, %v739_v46, %v755_v53 }
  0xa1   : > { %v2030_v49 = vpop.permute.xlu1 %1537  ;;  %v1524_v23 = vunpack.i.l.bf16 %v2037_v59  ;;  %v1525_v15 = vunpack.i.h.bf16 %v2037_v59 }
  0xa2   : > { %v1540_v55 = vunpack.i.h.bf16 %v2030_v49  ;;  %v1539_v57 = vunpack.i.l.bf16 %v2030_v49  ;;  %v831_v49 = vsel %vm656_vm3, %v738_v52, %v754_v54 }
  0xa3   : > { %v770_v46 = vsel %vm769_vm6, %v1524_v23, %v1525_v15 }
  0xa4   : > { %v1533_v20 = vpop.permute.xlu0 %1532  ;;  %v788_v27 = vsel %vm785_vm7, %v1539_v57, %v1540_v55 }
  0xa5   : > { %v2039_v60 = vpop.permute.xlu1 %1547  ;;  %v1534_v24 = vunpack.i.l.bf16 %v1533_v20  ;;  %v1535_v58 = vunpack.i.h.bf16 %v1533_v20 }
  0xa6   : > { %v1549_v45 = vunpack.i.l.bf16 %v2039_v60 }
  0xa7   : > { %v834_v34 = vsel %vm656_vm3, %v1524_v23, %v1534_v24  ;;  %v787_v29 = vsel %vm785_vm7, %v1535_v58, %v1539_v57  ;;  %v786_v30 = vsel %vm785_vm7, %v1534_v24, %v1535_v58  ;;  %v1726_v24 = vpack.i.bf16 %v832_v17, %v831_v49 }
  0xa8   : > { %v2085_v8 = vpop.permute.xlu0 %1542  ;;  %v1696_v36 = vpack.i.bf16 %v834_v34, %v830_v33  ;;  %v835_v53 = vsel %vm656_vm3, %v770_v46, %v786_v30 }
  0xa9   : > { %v2061_v21 = vpop.permute.xlu1 %1557  ;;  %v1545_v4 = vunpack.i.h.bf16 %v2085_v8  ;;  %v1544_v5 = vunpack.i.l.bf16 %v2085_v8 }
  0xaa   : > { %1697 = vrot.lane.b32.xlu1 %v1696_v36, %s1822_s11  ;;  %v1559_v61 = vunpack.i.l.bf16 %v2061_v21  ;;  %v1560_v47 = vunpack.i.h.bf16 %v2061_v21 }
  0xab   : > { %v803_v28 = vsel %vm801_vm8, %v1545_v4, %v1549_v45  ;;  %v802_v8 = vsel %vm801_vm8, %v1544_v5, %v1545_v4 }
  0xac   : > { %v1553_v62 = vpop.permute.xlu0 %1552  ;;  %v839_v55 = vsel %vm656_vm3, %v802_v8, %v1916_v1 }
  0xad   : > { %v2087_v37 = vpop.permute.xlu1 %1567  ;;  %v1555_v12 = vunpack.i.h.bf16 %v1553_v62  ;;  %v1554_v14 = vunpack.i.l.bf16 %v1553_v62 }
  0xae   : > { %1707 = vrot.lane.b32.xlu1 %v1706_v42, %s1822_s11  ;;  %v1570_v20 = vunpack.i.h.bf16 %v2087_v37  ;;  %v1569_v22 = vunpack.i.l.bf16 %v2087_v37  ;;  %v771_v42 = vsel %vm769_vm6, %v1525_v15, %v1529_v48 }
  0xaf   : > { %v820_v25 = vsel %vm451_vm2, %v1554_v14, %v1555_v12  ;;  %v821_v26 = vsel %vm451_vm2, %v1555_v12, %v1559_v61  ;;  %v836_v54 = vsel %vm656_vm3, %v771_v42, %v787_v29  ;;  %v819_v49 = vsel %vm451_vm2, %v1560_v47, %v1554_v14 }
  0xb0   : > { %v1563_v32 = vpop.permute.xlu0 %1562  ;;  %v1701_v33 = vpack.i.bf16 %v821_v26, %v820_v25  ;;  %v469_v59 = vsel %vm467_vm9, %v1569_v22, %v1570_v20  ;;  %v1731_v1 = vpack.i.bf16 %v836_v54, %v835_v53  ;;  %v1827_v47 = vmov 0.0  }
  0xb1   : > { %v2110_v63 = vpop.permute.xlu1 %1577  ;;  %v1565_v36 = vunpack.i.h.bf16 %v1563_v32  ;;  %v1564_v38 = vunpack.i.l.bf16 %v1563_v32  ;;  %1023 = vmatprep.mubr.f32.mxu0 %v1827_v47  ;;  %1358 = vmatprep.mubr.msk.f32.mxu1 %vm1828_vm14, %v1827_v47 }
  0xb2   : > { %1702 = vrot.lane.b32.xlu0 %v1701_v33, %s1822_s11  ;;  %1717 = vrot.lane.b32.xlu1 %v1716_v44, %s1822_s11  ;;  %v1579_v52 = vunpack.i.l.bf16 %v2110_v63  ;;  %v1580_v23 = vunpack.i.h.bf16 %v2110_v63  ;;  %v840_v44 = vsel %vm656_vm3, %v803_v28, %v1923_v3  ;;  %v756_v63 = vsel %vm753_vm5, %v1519_v41, %v1520_v40 }
  0xb3   : > { %v453_v58 = vsel %vm451_vm2, %v1564_v38, %v1565_v36  ;;  %v837_v3 = vsel %vm656_vm3, %v772_v6, %v788_v27  ;;  %v1741_v29 = vpack.i.bf16 %v840_v44, %v839_v55  ;;  %v838_v40 = vsel %vm656_vm3, %v1544_v5, %v1954_v13 }
  0xb4   : > { %v1573_v48 = vpop.permute.xlu0 %1572  ;;  %v658_v25 = vsel %vm656_vm3, %v1970_v18, %v453_v58  ;;  %v452_v26 = vsel %vm451_vm2, %v1579_v52, %v1564_v38  ;;  %v454_v6 = vsel %vm451_vm2, %v1565_v36, %v1580_v23  ;;  %v1550_v18 = vunpack.i.h.bf16 %v2039_v60 }
  0xb5   : > { %v1588_v34 = vpop.permute.xlu1 %1587  ;;  %v1575_v62 = vunpack.i.h.bf16 %v1573_v48  ;;  %v1574_v4 = vunpack.i.l.bf16 %v1573_v48  ;;  %v1746_v13 = vpack.i.bf16 %v819_v49, %v838_v40  ;;  %v657_v33 = vsel %vm656_vm3, %v1965_v16, %v452_v26 }
  0xb6   : > { %v1590_v12 = vunpack.i.h.bf16 %v1588_v34  ;;  %v1589_v15 = vunpack.i.l.bf16 %v1588_v34  ;;  %1712 = vrot.lane.b32.xlu0 %v1711_v51, %s1822_s11  ;;  %1727 = vrot.lane.b32.xlu1 %v1726_v24, %s1822_s11  ;;  %v659_v2 = vsel %vm656_vm3, %v1972_v19, %v454_v6  ;;  %v804_v19 = vsel %vm801_vm8, %v1549_v45, %v1550_v18 }
  0xb7   : > { %v484_v17 = vsel %vm482_vm10, %v1574_v4, %v1575_v62  ;;  %v833_v52 = vsel %vm656_vm3, %v2083_v35, %v756_v63  ;;  %v841_v45 = vsel %vm656_vm3, %v804_v19, %v1914_v0  ;;  %v944_v35 = vld [vmem:[%s2361_s4] sm:$0xf] }
  0xb8   : > { %v1583_v43 = vpop.permute.xlu0 %1582  ;;  %v661_v51 = vsel %vm656_vm3, %v469_v59, %v484_v17  ;;  %v483_v30 = vsel %vm482_vm10, %v1589_v15, %v1574_v4  ;;  %v485_v32 = vsel %vm482_vm10, %v1575_v62, %v1590_v12  ;;  %v1736_v60 = vpack.i.bf16 %v837_v3, %v833_v52 }
  0xb9   : > { %v2152_v57 = vpop.permute.xlu1 %1597  ;;  %v1585_v27 = vunpack.i.h.bf16 %v1583_v43  ;;  %v1584_v14 = vunpack.i.l.bf16 %v1583_v43  ;;  %v1361_v5 = vpack.c.bf16 %v661_v51, %v658_v25  ;;  %v1829_v12 = vmov 0  }
  0xba   : > { %1722 = vrot.lane.b32.xlu0 %v1721_v39, %s1822_s11  ;;  %1742 = vrot.lane.b32.xlu1 %v1741_v29, %s1822_s11  ;;  %v1600_v34 = vunpack.i.h.bf16 %v2152_v57  ;;  %v1599_v9 = vunpack.i.l.bf16 %v2152_v57  ;;  %v1751_v0 = vpack.i.bf16 %v1559_v61, %v841_v45 }
  0xbb   : > { %v468_v28 = vsel %vm467_vm9, %v1584_v14, %v1569_v22  ;;  %v470_v8 = vsel %vm467_vm9, %v1570_v20, %v1585_v27  ;;  %1362 = vmatprep.subr.bf16.mxu0 %v1361_v5  ;;  %1756 = vset.pattern.permute.xlu1 %v1829_v12 }
  0xbc   : > { %v1593_v39 = vpop.permute.xlu0 %1592  ;;  %v660_v16 = vsel %vm656_vm3, %v468_v28, %v483_v30  ;;  %v662_v38 = vsel %vm656_vm3, %v470_v8, %v485_v32  ;;  %v514_v53 = vsel %vm512_vm11, %v1599_v9, %v1600_v34  ;;  %1757 = vset.pattern.permute.xlu0 %v1829_v12 }
  0xbd   : > { %v2170_v41 = vpop.permute.xlu1 %1607  ;;  %v1595_v42 = vunpack.i.h.bf16 %v1593_v39  ;;  %v1594_v46 = vunpack.i.l.bf16 %v1593_v39  ;;  %v1363_v20 = vpack.c.bf16 %v660_v16, %v657_v33  ;;  %v1392_v24 = vpack.c.bf16 %v662_v38, %v659_v2 }
  0xbe   : > { %v1610_v22 = vunpack.i.h.bf16 %v2170_v41  ;;  %v1609_v37 = vunpack.i.l.bf16 %v2170_v41  ;;  %1732 = vrot.lane.b32.xlu0 %v1731_v1, %s1822_s11  ;;  %1747 = vrot.lane.b32.xlu1 %v1746_v13, %s1822_s11 }
  0xbf   : > { %v499_v54 = vsel %vm497_vm12, %v1594_v46, %v1595_v42  ;;  %1364 = vmatpush1.bf16.msra.mxu0 %v1363_v20  ;;  %1393 = vmatpush3.bf16.msra.mxu1 %v1392_v24 }
  0xc0   : > { %v1603_v59 = vpop.permute.xlu0 %1602  ;;  %v544_v48 = vsel %vm542_vm13, %v1609_v37, %v1610_v22  ;;  %1394 = vmatprep.subr.bf16.mxu1 %v1825_v31  ;;  %v664_v4 = vsel %vm656_vm3, %v499_v54, %v514_v53 }
  0xc1   : > { %v1618_v36 = vpop.permute.xlu1 %1617  ;;  %v1605_v55 = vunpack.i.h.bf16 %v1603_v59  ;;  %v1604_v44 = vunpack.i.l.bf16 %v1603_v59 }
  0xc2   : > { %1737 = vrot.lane.b32.xlu0 %v1736_v60, %s1822_s11  ;;  %v1620_v58 = vunpack.i.h.bf16 %v1618_v36  ;;  %v1619_v62 = vunpack.i.l.bf16 %v1618_v36  ;;  %947 = vperm.xlu1 %1756, %v944_v35  }
  0xc3   : > { %v529_v57 = vsel %vm527_vm15, %v1604_v44, %v1605_v55 }
  0xc4   : > { %v1613_v15 = vpop.permute.xlu0 %1612  ;;  %v667_v1 = vsel %vm656_vm3, %v529_v57, %v544_v48  ;;  %v513_v43 = vsel %vm512_vm11, %v1619_v62, %v1599_v9  ;;  %v515_v29 = vsel %vm512_vm11, %v1600_v34, %v1620_v58 }
  0xc5   : > { %v1628_v23 = vpop.permute.xlu1 %1627  ;;  %v1615_v3 = vunpack.i.h.bf16 %v1613_v15  ;;  %v1614_v49 = vunpack.i.l.bf16 %v1613_v15  ;;  %v1365_v26 = vpack.c.bf16 %v667_v1, %v664_v4 }
  0xc6   : > { %v1630_v17 = vunpack.i.h.bf16 %v1628_v23  ;;  %v1629_v25 = vunpack.i.l.bf16 %v1628_v23  ;;  %1752 = vrot.lane.b32.xlu0 %v1751_v0, %s1822_s11 }
  0xc7   : > { %v498_v40 = vsel %vm497_vm12, %v1614_v49, %v1594_v46  ;;  %v500_v21 = vsel %vm497_vm12, %v1595_v42, %v1615_v3  ;;  %1366 = vmatprep.subr.bf16.mxu0 %v1365_v26 }
  0xc8   : > { %v1623_v61 = vpop.permute.xlu0 %1622  ;;  %v543_v51 = vsel %vm542_vm13, %v1629_v25, %v1609_v37  ;;  %v545_v6 = vsel %vm542_vm13, %v1610_v22, %v1630_v17  ;;  %v663_v30 = vsel %vm656_vm3, %v498_v40, %v513_v43  ;;  %v665_v32 = vsel %vm656_vm3, %v500_v21, %v515_v29 }
  0xc9   : > { %v1638_v63 = vpop.permute.xlu1 %1637  ;;  %v1625_v27 = vunpack.i.h.bf16 %v1623_v61  ;;  %v1624_v14 = vunpack.i.l.bf16 %v1623_v61 }
  0xca   : > { %v1639_v36 = vunpack.i.l.bf16 %v1638_v63  ;;  %v1640_v19 = vunpack.i.h.bf16 %v1638_v63 }
  0xcb   : > { %v528_v18 = vsel %vm527_vm15, %v1624_v14, %v1604_v44  ;;  %v530_v13 = vsel %vm527_vm15, %v1605_v55, %v1625_v27 }
  0xcc   : > { %v1633_v5 = vpop.permute.xlu0 %1632  ;;  %v666_v33 = vsel %vm656_vm3, %v528_v18, %v543_v51  ;;  %v668_v34 = vsel %vm656_vm3, %v530_v13, %v545_v6  ;;  %v581_v24 = vsel %vm451_vm2, %v1639_v36, %v2032_v50  ;;  %v582_v55 = vsel %vm451_vm2, %v2032_v50, %v1640_v19 }
  0xcd   : > { %v1648_v41 = vpop.permute.xlu1 %1647  ;;  %v1635_v8 = vunpack.i.h.bf16 %v1633_v5  ;;  %v1634_v2 = vunpack.i.l.bf16 %v1633_v5  ;;  %v1367_v9 = vpack.c.bf16 %v666_v33, %v663_v30  ;;  %v1395_v39 = vpack.c.bf16 %v668_v34, %v665_v32 }
  0xce   : > { %v1650_v38 = vunpack.i.h.bf16 %v1648_v41  ;;  %v1649_v42 = vunpack.i.l.bf16 %v1648_v41 }
  0xcf   : > { %v559_v16 = vsel %vm557_vm0, %v1634_v2, %v1635_v8  ;;  %1368 = vmatpush1.bf16.msra.mxu0 %v1367_v9  ;;  %1396 = vmatpush3.bf16.msra.mxu1 %v1395_v39 }
  0xd0   : > { %v1643_v46 = vpop.permute.xlu0 %1642  ;;  %1397 = vmatprep.subr.bf16.mxu1 %v1825_v31  ;;  %v670_v20 = vsel %vm656_vm3, %v559_v16, %v1934_v7  ;;  %v560_v53 = vsel %vm557_vm0, %v1635_v8, %v1650_v38  ;;  %v558_v54 = vsel %vm557_vm0, %v1649_v42, %v1634_v2  ;;  %v580_v7 = vsel %vm451_vm2, %v2034_v56, %v1639_v36  ;;  %vm2301_vm2 = vmpackc.low %vm656_vm3, %vm1830_vm1 }
  0xd1   : > { %v2233_v28 = vpop.permute.xlu1 %1657  ;;  %v1645_v22 = vunpack.i.h.bf16 %v1643_v46  ;;  %v1644_v37 = vunpack.i.l.bf16 %v1643_v46  ;;  %v669_v44 = vsel %vm656_vm3, %v558_v54, %v1943_v10  ;;  %v671_v35 = vsel %vm656_vm3, %v560_v53, %v1947_v11 }
  0xd2   : > { %v1660_v62 = vunpack.i.h.bf16 %v2233_v28  ;;  %v1659_v4 = vunpack.i.l.bf16 %v2233_v28 }
  0xd3   : > { %v595_v52 = vsel %vm467_vm9, %v1644_v37, %v1645_v22 }
  0xd4   : > { %v1653_v59 = vpop.permute.xlu0 %1652  ;;  %v673_v60 = vsel %vm656_vm3, %v581_v24, %v595_v52  ;;  %v609_v17 = vsel %vm482_vm10, %v1659_v4, %v1660_v62 }
  0xd5   : > { %v2237_v47 = vpop.permute.xlu1 %1667  ;;  %v1655_v23 = vunpack.i.h.bf16 %v1653_v59  ;;  %v1654_v45 = vunpack.i.l.bf16 %v1653_v59  ;;  %v1369_v48 = vpack.c.bf16 %v673_v60, %v670_v20 }
  0xd6   : > { %v1670_v10 = vunpack.i.h.bf16 %v2237_v47  ;;  %v1669_v15 = vunpack.i.l.bf16 %v2237_v47 }
  0xd7   : > { %v594_v57 = vsel %vm467_vm9, %v1654_v45, %v1644_v37  ;;  %v596_v58 = vsel %vm467_vm9, %v1645_v22, %v1655_v23  ;;  %1370 = vmatprep.subr.bf16.mxu0 %v1369_v48 }
  0xd8   : > { %v672_v50 = vsel %vm656_vm3, %v580_v7, %v594_v57  ;;  %v674_v56 = vsel %vm656_vm3, %v582_v55, %v596_v58  ;;  %v1663_v0 = vpop.permute.xlu0 %1662  ;;  %v637_v29 = vsel %vm512_vm11, %v1669_v15, %v1670_v10 }
  0xd9   : > { %v1678_v12 = vpop.permute.xlu1 %1677  ;;  %v1371_v11 = vpack.c.bf16 %v672_v50, %v669_v44  ;;  %v1398_v63 = vpack.c.bf16 %v674_v56, %v671_v35  ;;  %v1665_v1 = vunpack.i.h.bf16 %v1663_v0  ;;  %v1664_v3 = vunpack.i.l.bf16 %v1663_v0 }
  0xda   : > { %v1680_v41 = vunpack.i.h.bf16 %v1678_v12  ;;  %v1679_v51 = vunpack.i.l.bf16 %v1678_v12 }
  0xdb   : > { %1372 = vmatpush1.bf16.msra.mxu0 %v1371_v11  ;;  %1399 = vmatpush3.bf16.msra.mxu1 %v1398_v63  ;;  %v623_v49 = vsel %vm497_vm12, %v1664_v3, %v1665_v1 }
  0xdc   : > { %v1673_v25 = vpop.permute.xlu0 %1672  ;;  %1400 = vmatprep.subr.bf16.mxu1 %v1825_v31  ;;  %v676_v21 = vsel %vm656_vm3, %v609_v17, %v623_v49  ;;  %v608_v34 = vsel %vm482_vm10, %v1679_v51, %v1659_v4  ;;  %v610_v28 = vsel %vm482_vm10, %v1660_v62, %v1680_v41 }
  0xdd   : > { %v1675_v26 = vunpack.i.h.bf16 %v1673_v25  ;;  %v1674_v43 = vunpack.i.l.bf16 %v1673_v25  ;;  %v1688_v40 = vpop.permute.xlu1 %1687 }
  0xde   : > { %v1690_v27 = vunpack.i.h.bf16 %v1688_v40  ;;  %v1689_v18 = vunpack.i.l.bf16 %v1688_v40 }
  0xdf   : > { %v651_v61 = vsel %vm527_vm15, %v1674_v43, %v1675_v26 }
  0xe0   : > { %v1683_v6 = vpop.permute.xlu0 %1682  ;;  %v679_v14 = vsel %vm656_vm3, %v637_v29, %v651_v61  ;;  %v636_v39 = vsel %vm512_vm11, %v1689_v18, %v1669_v15  ;;  %v638_v36 = vsel %vm512_vm11, %v1670_v10, %v1690_v27 }
  0xe1   : > { %v1685_v30 = vunpack.i.h.bf16 %v1683_v6  ;;  %v1684_v32 = vunpack.i.l.bf16 %v1683_v6  ;;  %v1373_v13 = vpack.c.bf16 %v679_v14, %v676_v21 }
  0xe3   : > { %v622_v5 = vsel %vm497_vm12, %v1684_v32, %v1664_v3  ;;  %v624_v33 = vsel %vm497_vm12, %v1665_v1, %v1685_v30  ;;  %1374 = vmatprep.subr.bf16.mxu0 %v1373_v13 }
  0xe4   : > { %v1693_v8 = vpop.permute.xlu0 %1692  ;;  %v675_v16 = vsel %vm656_vm3, %v608_v34, %v622_v5  ;;  %v677_v38 = vsel %vm656_vm3, %v610_v28, %v624_v33 }
  0xe5   : > { %v1695_v2 = vunpack.i.h.bf16 %v1693_v8  ;;  %v1694_v9 = vunpack.i.l.bf16 %v1693_v8 }
  0xe7   : > { %v650_v42 = vsel %vm527_vm15, %v1694_v9, %v1674_v43  ;;  %v652_v46 = vsel %vm527_vm15, %v1675_v26, %v1695_v2 }
  0xe8   : > { %v678_v22 = vsel %vm656_vm3, %v636_v39, %v650_v42  ;;  %v680_v37 = vsel %vm656_vm3, %v638_v36, %v652_v46 }
  0xe9   : > { %v1375_v47 = vpack.c.bf16 %v678_v22, %v675_v16  ;;  %v1401_v19 = vpack.c.bf16 %v680_v37, %v677_v38 }
  0xeb   : > { %1376 = vmatpush1.bf16.msra.mxu0 %v1375_v47  ;;  %1402 = vmatpush3.bf16.msra.mxu1 %v1401_v19 }
  0xec   : > { %1403 = vmatprep.subr.bf16.mxu1 %v1825_v31 }
 0x11c   : > { %v1698_v20 = vpop.permute.xlu1 %1697 }
 0x11d   : > { %v1700_v49 = vunpack.i.h.bf16 %v1698_v20  ;;  %v1699_v17 = vunpack.i.l.bf16 %v1698_v20  ;;  %v943_v20 = vld [vmem:[%s2360_s3] sm:$0xf] }
 0x120   : > { %v1708_v24 = vpop.permute.xlu1 %1707 }
 0x121   : > { %v1710_v54 = vunpack.i.h.bf16 %v1708_v24  ;;  %v1709_v59 = vunpack.i.l.bf16 %v1708_v24 }
 0x123   : > { %v911_v44 = vsel %vm542_vm13, %v1709_v59, %v1710_v54 }
 0x124   : > { %v2283_v52 = vpop.permute.xlu0 %1702  ;;  %v1718_v53 = vpop.permute.xlu1 %1717 }
 0x125   : > { %v1719_v60 = vunpack.i.l.bf16 %v1718_v53  ;;  %v1720_v48 = vunpack.i.h.bf16 %v1718_v53  ;;  %v1705_v29 = vunpack.i.h.bf16 %v2283_v52  ;;  %v1704_v40 = vunpack.i.l.bf16 %v2283_v52  ;;  %v1100_v53 = vld [vmem:[%s421_s23] sm:$0xff] }
 0x127   : > { %v910_v57 = vsel %vm542_vm13, %v1719_v60, %v1709_v59  ;;  %v926_v33 = vsel %vm542_vm13, %v1704_v40, %v1705_v29 }
 0x128   : > { %v1713_v23 = vpop.permute.xlu0 %1712  ;;  %v1728_v45 = vpop.permute.xlu1 %1727 }
 0x129   : > { %v1715_v55 = vunpack.i.h.bf16 %v1713_v23  ;;  %v1714_v7 = vunpack.i.l.bf16 %v1713_v23  ;;  %v1730_v10 = vunpack.i.h.bf16 %v1728_v45  ;;  %v1729_v15 = vunpack.i.l.bf16 %v1728_v45  ;;  %v1111_v23 = vld [vmem:[%s2362_s5] sm:$0x7] }
 0x12a   : > { %v1103_v45 = vcombine.high %v1100_v53, %v1100_v53 }
 0x12b   : > { %v914_v35 = vsel %vm542_vm13, %v1714_v7, %v1715_v55  ;;  %v913_v58 = vsel %vm542_vm13, %v1720_v48, %v1714_v7  ;;  %v917_v6 = vsel %vm542_vm13, %v1729_v15, %v1730_v10  ;;  %v916_v30 = vsel %vm542_vm13, %v1699_v17, %v1729_v15 }
 0x12c   : > { %v1723_v62 = vpop.permute.xlu0 %1722  ;;  %v1743_v4 = vpop.permute.xlu1 %1742  ;;  %v1377_v12 = vpack.c.bf16 %v914_v35, %v911_v44  ;;  %v1379_v50 = vpack.c.bf16 %v913_v58, %v910_v57 }
 0x12d   : > { %v1725_v56 = vunpack.i.h.bf16 %v1723_v62  ;;  %v1724_v0 = vunpack.i.l.bf16 %v1723_v62  ;;  %v1745_v11 = vunpack.i.h.bf16 %v1743_v4  ;;  %v1744_v63 = vunpack.i.l.bf16 %v1743_v4  ;;  %v1101_v4 = vld [vmem:[%s421_s23 + $0x8] sm:$0xf] }
 0x12e   : > { %1378 = vmatprep.subr.bf16.mxu0 %v1377_v12 }
 0x12f   : > { %1380 = vmatpush1.bf16.msra.mxu0 %v1379_v50  ;;  %v912_v1 = vsel %vm542_vm13, %v1710_v54, %v1724_v0  ;;  %v915_v3 = vsel %vm542_vm13, %v1715_v55, %v1725_v56  ;;  %v923_v27 = vsel %vm542_vm13, %v1744_v63, %v1745_v11 }
 0x130   : > { %v1733_v25 = vpop.permute.xlu0 %1732  ;;  %v1748_v26 = vpop.permute.xlu1 %1747  ;;  %v1404_v43 = vpack.c.bf16 %v915_v3, %v912_v1  ;;  %v1385_v2 = vpack.c.bf16 %v926_v33, %v923_v27 }
 0x131   : > { %v1735_v21 = vunpack.i.h.bf16 %v1733_v25  ;;  %v1734_v61 = vunpack.i.l.bf16 %v1733_v25  ;;  %v1750_v41 = vunpack.i.h.bf16 %v1748_v26  ;;  %v1749_v51 = vunpack.i.l.bf16 %v1748_v26 }
 0x132   : > { %1405 = vmatpush3.bf16.msra.mxu1 %v1404_v43 }
 0x133   : > { %v920_v14 = vsel %vm542_vm13, %v1734_v61, %v1735_v21  ;;  %v919_v32 = vsel %vm542_vm13, %v1700_v49, %v1734_v61  ;;  %1406 = vmatprep.subr.bf16.mxu1 %v1825_v31  ;;  %v925_v9 = vsel %vm542_vm13, %v1750_v41, %v1704_v40  ;;  %v922_v39 = vsel %vm542_vm13, %v1749_v51, %v1744_v63 }
 0x134   : > { %v1738_v18 = vpop.permute.xlu0 %1737  ;;  %v1381_v13 = vpack.c.bf16 %v920_v14, %v917_v6  ;;  %v1383_v5 = vpack.c.bf16 %v919_v32, %v916_v30  ;;  %v1388_v46 = vpack.c.bf16 %v925_v9, %v922_v39 }
 0x135   : > { %v1740_v34 = vunpack.i.h.bf16 %v1738_v18  ;;  %v1739_v28 = vunpack.i.l.bf16 %v1738_v18 }
 0x136   : > { %1382 = vmatprep.subr.bf16.mxu0 %v1381_v13 }
 0x137   : > { %1384 = vmatpush1.bf16.msra.mxu0 %v1383_v5  ;;  %v918_v36 = vsel %vm542_vm13, %v1730_v10, %v1739_v28  ;;  %v921_v16 = vsel %vm542_vm13, %v1735_v21, %v1740_v34 }
 0x138   : > { %v1753_v38 = vpop.permute.xlu0 %1752  ;;  %1387 = vmatprep.subr.msk.bf16.mxu0 %vm2301_vm2, %v1385_v2  ;;  %v1407_v42 = vpack.c.bf16 %v921_v16, %v918_v36 }
 0x139   : > { %v1755_v22 = vunpack.i.h.bf16 %v1753_v38  ;;  %v1754_v37 = vunpack.i.l.bf16 %v1753_v38 }
 0x13a   : > { %1408 = vmatpush3.bf16.msra.mxu1 %v1407_v42 }
 0x13b   : > { %v924_v47 = vsel %vm542_vm13, %v1745_v11, %v1754_v37  ;;  %v927_v19 = vsel %vm542_vm13, %v1705_v29, %v1755_v22  ;;  %1390 = vmatpush1.bf16.msk.msra.mxu0 %vm2301_vm2, %v1388_v46  ;;  %1409 = vmatprep.subr.bf16.mxu1 %v1825_v31  ;;  %v1113_v31 = vlaneseq }
 0x13c   : > { %v1410_v24 = vpack.c.bf16 %v927_v19, %v924_v47 }
 0x13d   : > { %v1114_v52 = vshrl.u32 %v1113_v31, 7 }
 0x13e   : > { %1310 = vmatmul.mubr.msk.f32.vlgmr.msra.gmra.mrb[0].mxu0 %vm512_vm11, %v943_v20  ;;  %1412 = vmatpush3.bf16.msk.msra.mxu1 %vm2301_vm2, %v1410_v24 }
 0x13f   : > { %v1115_v59 = vsub.s32 0, %v1114_v52  ;;  %v1119_v48 = vsub.s32 1, %v1114_v52  ;;  %v1123_v35 = vsub.s32 2, %v1114_v52 }
 0x141   : > { %1359 = vmatmul.mubr.msk.f32.vlgmr.msra.gmra.mrb[0].mxu1 %vm512_vm11, %v943_v20  ;;  %v948_v54 = vpop.permute.xlu1 %947  ;;  %v1116_v58 = vrot.slane %v1111_v23, %v1115_v59  ;;  %v1120_v50 = vrot.slane %v1111_v23, %v1119_v48  ;;  %v1124_v63 = vrot.slane %v1111_v23, %v1123_v35 }
 0x211   : > { %v1025_v60 = vpop.f32.mrb[0].mxu0 }
 0x212   : > { %v1026_v55 = vadd.f32 %v1025_v60, %v948_v54  ;;  %v1027_v7 = vpop.f32.mrb[1].mxu0 }
 0x213   : > { %v1028_v44 = vadd.f32 %v1027_v7, %v948_v54 }
 0x214   : > { %v1105_v57 = vadd.f32 %v1100_v53, %v1026_v55  ;;  %v1096_v62 = vpop.f32.mrb[0].mxu1 }
 0x215   : > { %v1106_v12 = vadd.f32 %v1103_v45, %v1028_v44  ;;  %v1097_v56 = vadd.f32 %v1096_v62, %v948_v54  ;;  %v1360_v0 = vpop.f32.mrb[1].mxu1 }
 0x216   : > { %v1108_v10 = vmax.f32 %v1105_v57, 0.0 }
 0x217   : > { %v1109_v15 = vmax.f32 %v1106_v12, 0.0  ;;  %v1107_v11 = vadd.f32 %v1101_v4, %v1097_v56 }
 0x218   : > { %v1128_v1 = vmul.f32 %v1116_v58, %v1108_v10 }
 0x219   : > { %v1129_v3 = vmul.f32 %v1120_v50, %v1109_v15  ;;  %v1110_v49 = vmax.f32 %v1107_v11, 0.0 }
 0x21b   : > { %v1133_v17 = vcombine.low %v1128_v1, %v1129_v3  ;;  %v1130_v25 = vmul.f32 %v1124_v63, %v1110_v49 }
 0x21d   : > { %1135 = vst [vmem:[%s430_s12] sm:$0xff] %v1133_v17  ;;  %1136 = vst [vmem:[%s430_s12 + $0x8] sm:$0xf] %v1130_v25 }
 0x21e PF: > { %s17_s28 = sadd.s32 1, %s1809_s28   ;;  %s2367_s24 = smov %s1801_s26 }
 0x21f   : > { %p14_p10 = scmp.ge.s32.totalorder %s17_s28, 34   ;;  %s2368_s25 = smov %s1805_s27 }
 0x220   : > { %s2369_s26 = smov %s2372_s29  ;;  %s2370_s27 = smov %s2376_s30 }
 0x221   :  { %16 = sbr.rel (!%p14_p10) target bundleno = 3 (0x3), region = 87 }

</bundles_post_ra>
